<compile_context>
chip_gen: v6e
topology: v6e:2x2x1
jax: 0.10.0
libtpu: 0.0.40
codegen_flags: <defaults>
</compile_context>

<pallas_src>
import math

import jax
import jax.numpy as jnp
import numpy as np
from jax.experimental import pallas as pl
from jax.experimental.pallas import tpu as pltpu


def _cab_kernel(g_ref, m_ref, s_ref, wqkv_ref, bqkv_ref, wfc_ref, bfc_ref, o_ref):
    bb, h = g_ref.shape                      # batch tile, hidden
    wqkv = wqkv_ref[...]                     # [H, 3H]  (wq/sqrt(H) | wk | wv)
    bqkv = bqkv_ref[...]                     # [1, 3H]
    wfc = wfc_ref[...]                       # [H, H]
    bfc = bfc_ref[...]                       # [1, H]

    # Single-MXU-pass QKV stacking is only used when the concat along the
    # sublane axis is tile-aligned (static trace-time decision).
    stack_ok = (bb % 8 == 0)

    def qkv_project(x):
        return jnp.dot(x, wqkv, preferred_element_type=jnp.float32) + bqkv

    def attention(xq, xkv=None):
        if xkv is None:                      # self-attention: Q, K, V share a source
            proj_q = qkv_project(xq)
            proj_kv = proj_q
        elif stack_ok:                       # cross-att: one [2bb,H]x[H,3H] matmul
            proj = qkv_project(jnp.concatenate([xq, xkv], axis=0))
            proj_q, proj_kv = proj[:bb], proj[bb:]
        else:                                # small/unaligned tiles: two matmuls
            proj_q = qkv_project(xq)
            proj_kv = qkv_project(xkv)

        q = proj_q[:, 0:h]                   # 1/sqrt(head_dim) already folded into wq/bq
        k = proj_kv[:, h:2 * h]
        v = proj_kv[:, 2 * h:3 * h]

        # energy[b, i, j] = q[b, i] * k[b, j]  (n_heads=1 outer product)
        e = q[:, :, None] * k[:, None, :]                       # [bb, h, h]
        p = jnp.exp(e - jnp.max(e, axis=-1, keepdims=True))     # unnormalized softmax
        # Deferred normalization: never materialize attn = p / denom over the slab.
        denom = jnp.sum(p, axis=-1)                             # [bb, h]
        num = jnp.sum(p * v[:, None, :], axis=-1)               # [bb, h]
        w = num * pl.reciprocal(denom, approx=True)             # EUP slot

        # output projection
        return jnp.dot(w, wfc, preferred_element_type=jnp.float32) + bfc

    g = g_ref[...]
    g = g + attention(m_ref[...], g)         # cross-att (Q=morgan, K/V=graph) + residual
    g = attention(g)                         # self-att  (Q=K=V=graph)
    o_ref[...] = attention(g, s_ref[...])    # cross-att (Q=graph, K/V=sequence)


# VMEM budget for the f32 softmax temporaries (~4 live [bb,H,H] slabs). 8 MiB is
# comfortably inside v7x's 32 MiB scoped / 64 MiB physical VMEM.
_SLAB_VMEM_BUDGET = 8 << 20


def _pick_block_b(batch, hid):
    """Largest VMEM-budgeted, sublane-aligned batch tile; pads if B doesn't divide."""
    per_row = 4 * 4 * hid * hid                       # ~4 live f32 [hid,hid] slices / row
    cap = max(8, min(1024, (_SLAB_VMEM_BUDGET // per_row) // 8 * 8))
    if batch <= cap:
        return batch                                  # single block == full array dims
    for cand in range(cap, 7, -8):                    # largest aligned divisor <= cap
        if batch % cand == 0:
            return cand
    return cap                                        # wrapper pads batch up to a multiple


@jax.jit
def cross_attention_block(graph_feature, morgan_feature, sequence_feature, packed):
    """CrossAttentionBlock.forward — fully fused into one pallas_call.

    `packed` must come from `pack_params` (one-time host-side prep)."""
    B, H = graph_feature.shape

    block_b = _pick_block_b(B, H)
    n_blocks = -(-B // block_b)
    padded_B = n_blocks * block_b

    feats = (graph_feature, morgan_feature, sequence_feature)
    if padded_B != B:
        pad = padded_B - B
        feats = tuple(jnp.pad(f, ((0, pad), (0, 0))) for f in feats)

    feat_spec = pl.BlockSpec((block_b, H), lambda i: (i, 0))

    def full_spec(shape):
        return pl.BlockSpec(shape, lambda i: (0, 0))

    out = pl.pallas_call(
        _cab_kernel,
        out_shape=jax.ShapeDtypeStruct((padded_B, H), jnp.float32),
        grid=(n_blocks,),
        in_specs=[feat_spec, feat_spec, feat_spec,
                  full_spec((H, 3 * H)), full_spec((1, 3 * H)),
                  full_spec((H, H)), full_spec((1, H))],
        out_specs=feat_spec,
        compiler_params=pltpu.CompilerParams(
            dimension_semantics=("parallel",),
            vmem_limit_bytes=48 << 20),
    )(*feats, packed["wqkv"], packed["bqkv"], packed["wfc"], packed["bfc"])

    if padded_B != B:
        out = out[:B]
    return out


def pack_params(params):
    """One-time param prep (call ONCE, outside the per-step path):
    fold 1/sqrt(head_dim) into the Q projection and pack QKV weights/biases."""
    H = params["wq"].shape[0]
    inv_scale = 1.0 / math.sqrt(float(H))
    return {
        "wqkv": jnp.concatenate(
            [params["wq"] * inv_scale, params["wk"], params["wv"]], axis=1),   # [H, 3H]
        "bqkv": jnp.concatenate(
            [params["bq"] * inv_scale, params["bk"], params["bv"]], axis=1),   # [1, 3H]
        "wfc": params["wfc"],
        "bfc": params["bfc"],
    }


def init_params(key, hid_dim):
    """Deterministic PyTorch-nn.Linear-style init: U(-1/sqrt(H), 1/sqrt(H))."""
    bound = 1.0 / math.sqrt(hid_dim)
    names = ["wq", "bq", "wk", "bk", "wv", "bv", "wfc", "bfc"]
    keys = jax.random.split(key, len(names))
    params = {}
    for name, k in zip(names, keys):
        shape = (hid_dim, hid_dim) if name.startswith("w") else (1, hid_dim)
        params[name] = jax.random.uniform(k, shape, jnp.float32, minval=-bound, maxval=bound)
    return params


# ---------------- pure-JAX reference (for correctness check) ----------------
def _attention_block_ref(q, k, v, p):
    H = q.shape[1]
    Q = q @ p["wq"] + p["bq"]
    K = k @ p["wk"] + p["bk"]
    V = v @ p["wv"] + p["bv"]
    energy = (Q[:, :, None] * K[:, None, :]) / math.sqrt(float(H))
    attn = jax.nn.softmax(energy, axis=-1)
    w = jnp.sum(attn * V[:, None, :], axis=-1)
    return w @ p["wfc"] + p["bfc"]


def _cross_attention_ref(g, m, s, p):
    g = g + _attention_block_ref(m, g, g, p)
    g = _attention_block_ref(g, g, g, p)
    return _attention_block_ref(g, s, s, p)


if __name__ == "__main__":
    H = 32  # hidden_size (args.hidden_size)
    key = jax.random.PRNGKey(0)
    kp, kdata = jax.random.split(key)

    params = init_params(kp, H)
    packed = jax.block_until_ready(pack_params(params))   # one-time prep, off the hot path

    # Primary shape from the module spec (batch=2) plus an aligned-batch check
    # (batch=16) that exercises the stacked single-matmul QKV path.
    for B in (2, 16):
        kg, km, ks, kdata = jax.random.split(kdata, 4)
        graph_feature = jax.random.normal(kg, (B, H), jnp.float32)
        morgan_feature = jax.random.normal(km, (B, H), jnp.float32)
        sequence_feature = jax.random.normal(ks, (B, H), jnp.float32)

        out = cross_attention_block(graph_feature, morgan_feature, sequence_feature, packed)
        out = jax.block_until_ready(out)

        ref = _cross_attention_ref(graph_feature, morgan_feature, sequence_feature, params)
        np.testing.assert_allclose(np.asarray(out), np.asarray(ref), rtol=1e-2, atol=1e-2)

    print("KERNEL_OK")
</pallas_src>

<mosaic_0001>
module attributes {stable_mosaic.version = 11 : i64} {
  func.func @_cab_kernel(%arg0: i32, %arg1: memref<2x32xf32, #tpu.memory_space<vmem>>, %arg2: memref<2x32xf32, #tpu.memory_space<vmem>>, %arg3: memref<2x32xf32, #tpu.memory_space<vmem>>, %arg4: memref<32x96xf32, #tpu.memory_space<vmem>>, %arg5: memref<1x96xf32, #tpu.memory_space<vmem>>, %arg6: memref<32x32xf32, #tpu.memory_space<vmem>>, %arg7: memref<1x32xf32, #tpu.memory_space<vmem>>, %arg8: memref<2x32xf32, #tpu.memory_space<vmem>>) attributes {dimension_semantics = [#tpu.dimension_semantics<parallel>], iteration_bounds = array<i64: 1>, scalar_prefetch = 0 : i64, scratch_operands = 0 : i64, tpu.core_type = #tpu.core_type<tc>, window_params = [{transform_indices = @transform_0, window_bounds = array<i64: 2, 32>}, {transform_indices = @transform_1, window_bounds = array<i64: 2, 32>}, {transform_indices = @transform_2, window_bounds = array<i64: 2, 32>}, {pipeline_mode = #tpu.pipeline_mode<synchronous>, transform_indices = @transform_3, window_bounds = array<i64: 32, 96>}, {pipeline_mode = #tpu.pipeline_mode<synchronous>, transform_indices = @transform_4, window_bounds = array<i64: 1, 96>}, {pipeline_mode = #tpu.pipeline_mode<synchronous>, transform_indices = @transform_5, window_bounds = array<i64: 32, 32>}, {pipeline_mode = #tpu.pipeline_mode<synchronous>, transform_indices = @transform_6, window_bounds = array<i64: 1, 32>}, {transform_indices = @transform_7, window_bounds = array<i64: 2, 32>}]} {
    %c0 = arith.constant 0 : index
    %c0_0 = arith.constant 0 : index
    %0 = vector.load %arg4[%c0, %c0_0] : memref<32x96xf32, #tpu.memory_space<vmem>>, vector<32x96xf32>
    %c0_1 = arith.constant 0 : index
    %c0_2 = arith.constant 0 : index
    %1 = vector.load %arg5[%c0_1, %c0_2] : memref<1x96xf32, #tpu.memory_space<vmem>>, vector<1x96xf32>
    %c0_3 = arith.constant 0 : index
    %c0_4 = arith.constant 0 : index
    %2 = vector.load %arg6[%c0_3, %c0_4] : memref<32x32xf32, #tpu.memory_space<vmem>>, vector<32x32xf32>
    %c0_5 = arith.constant 0 : index
    %c0_6 = arith.constant 0 : index
    %3 = vector.load %arg7[%c0_5, %c0_6] : memref<1x32xf32, #tpu.memory_space<vmem>>, vector<1x32xf32>
    %c0_7 = arith.constant 0 : index
    %c0_8 = arith.constant 0 : index
    %4 = vector.load %arg1[%c0_7, %c0_8] : memref<2x32xf32, #tpu.memory_space<vmem>>, vector<2x32xf32>
    %c0_9 = arith.constant 0 : index
    %c0_10 = arith.constant 0 : index
    %5 = vector.load %arg2[%c0_9, %c0_10] : memref<2x32xf32, #tpu.memory_space<vmem>>, vector<2x32xf32>
    %cst = arith.constant dense<0.000000e+00> : vector<2x96xf32>
    %6 = tpu.matmul %5, %0, %cst {dimension_numbers = #tpu.dot_dimension_numbers<[1], [0], [0], [1], [0, 0, 1, 1], [], []>} : vector<2x32xf32>, vector<32x96xf32>, vector<2x96xf32> -> vector<2x96xf32>
    %7 = vector.broadcast %1 : vector<1x96xf32> to vector<2x96xf32>
    %8 = arith.addf %6, %7 : vector<2x96xf32>
    %cst_11 = arith.constant dense<0.000000e+00> : vector<2x96xf32>
    %9 = tpu.matmul %4, %0, %cst_11 {dimension_numbers = #tpu.dot_dimension_numbers<[1], [0], [0], [1], [0, 0, 1, 1], [], []>} : vector<2x32xf32>, vector<32x96xf32>, vector<2x96xf32> -> vector<2x96xf32>
    %10 = vector.broadcast %1 : vector<1x96xf32> to vector<2x96xf32>
    %11 = arith.addf %9, %10 : vector<2x96xf32>
    %12 = vector.extract_strided_slice %8 {offsets = [0, 0], sizes = [2, 32], strides = [1, 1]} : vector<2x96xf32> to vector<2x32xf32>
    %13 = vector.extract_strided_slice %11 {offsets = [0, 32], sizes = [2, 32], strides = [1, 1]} : vector<2x96xf32> to vector<2x32xf32>
    %14 = vector.extract_strided_slice %11 {offsets = [0, 64], sizes = [2, 32], strides = [1, 1]} : vector<2x96xf32> to vector<2x32xf32>
    %15 = vector.shape_cast %12 : vector<2x32xf32> to vector<2x32x1xf32>
    %16 = vector.shape_cast %13 : vector<2x32xf32> to vector<2x1x32xf32>
    %17 = vector.broadcast %15 : vector<2x32x1xf32> to vector<2x32x32xf32>
    %18 = vector.broadcast %16 : vector<2x1x32xf32> to vector<2x32x32xf32>
    %19 = arith.mulf %17, %18 : vector<2x32x32xf32>
    %cst_12 = arith.constant dense<0xFF800000> : vector<2x32xf32>
    %20 = vector.multi_reduction <maximumf>, %19, %cst_12 [2] : vector<2x32x32xf32> to vector<2x32xf32>
    %21 = vector.shape_cast %20 : vector<2x32xf32> to vector<2x32x1xf32>
    %22 = vector.broadcast %21 : vector<2x32x1xf32> to vector<2x32x32xf32>
    %23 = arith.subf %19, %22 : vector<2x32x32xf32>
    %24 = math.exp %23 : vector<2x32x32xf32>
    %cst_13 = arith.constant dense<0.000000e+00> : vector<2x32xf32>
    %25 = vector.multi_reduction <add>, %24, %cst_13 [2] : vector<2x32x32xf32> to vector<2x32xf32>
    %26 = vector.shape_cast %14 : vector<2x32xf32> to vector<2x1x32xf32>
    %27 = vector.broadcast %26 : vector<2x1x32xf32> to vector<2x32x32xf32>
    %28 = arith.mulf %24, %27 : vector<2x32x32xf32>
    %cst_14 = arith.constant dense<0.000000e+00> : vector<2x32xf32>
    %29 = vector.multi_reduction <add>, %28, %cst_14 [2] : vector<2x32x32xf32> to vector<2x32xf32>
    %30 = tpu.reciprocal %25 {approx = true} : vector<2x32xf32> -> vector<2x32xf32>
    %31 = arith.mulf %29, %30 : vector<2x32xf32>
    %cst_15 = arith.constant dense<0.000000e+00> : vector<2x32xf32>
    %32 = tpu.matmul %31, %2, %cst_15 {dimension_numbers = #tpu.dot_dimension_numbers<[1], [0], [0], [1], [0, 0, 1, 1], [], []>} : vector<2x32xf32>, vector<32x32xf32>, vector<2x32xf32> -> vector<2x32xf32>
    %33 = vector.broadcast %3 : vector<1x32xf32> to vector<2x32xf32>
    %34 = arith.addf %32, %33 : vector<2x32xf32>
    %35 = arith.addf %4, %34 : vector<2x32xf32>
    %cst_16 = arith.constant dense<0.000000e+00> : vector<2x96xf32>
    %36 = tpu.matmul %35, %0, %cst_16 {dimension_numbers = #tpu.dot_dimension_numbers<[1], [0], [0], [1], [0, 0, 1, 1], [], []>} : vector<2x32xf32>, vector<32x96xf32>, vector<2x96xf32> -> vector<2x96xf32>
    %37 = vector.broadcast %1 : vector<1x96xf32> to vector<2x96xf32>
    %38 = arith.addf %36, %37 : vector<2x96xf32>
    %39 = vector.extract_strided_slice %38 {offsets = [0, 0], sizes = [2, 32], strides = [1, 1]} : vector<2x96xf32> to vector<2x32xf32>
    %40 = vector.extract_strided_slice %38 {offsets = [0, 32], sizes = [2, 32], strides = [1, 1]} : vector<2x96xf32> to vector<2x32xf32>
    %41 = vector.extract_strided_slice %38 {offsets = [0, 64], sizes = [2, 32], strides = [1, 1]} : vector<2x96xf32> to vector<2x32xf32>
    %42 = vector.shape_cast %39 : vector<2x32xf32> to vector<2x32x1xf32>
    %43 = vector.shape_cast %40 : vector<2x32xf32> to vector<2x1x32xf32>
    %44 = vector.broadcast %42 : vector<2x32x1xf32> to vector<2x32x32xf32>
    %45 = vector.broadcast %43 : vector<2x1x32xf32> to vector<2x32x32xf32>
    %46 = arith.mulf %44, %45 : vector<2x32x32xf32>
    %cst_17 = arith.constant dense<0xFF800000> : vector<2x32xf32>
    %47 = vector.multi_reduction <maximumf>, %46, %cst_17 [2] : vector<2x32x32xf32> to vector<2x32xf32>
    %48 = vector.shape_cast %47 : vector<2x32xf32> to vector<2x32x1xf32>
    %49 = vector.broadcast %48 : vector<2x32x1xf32> to vector<2x32x32xf32>
    %50 = arith.subf %46, %49 : vector<2x32x32xf32>
    %51 = math.exp %50 : vector<2x32x32xf32>
    %cst_18 = arith.constant dense<0.000000e+00> : vector<2x32xf32>
    %52 = vector.multi_reduction <add>, %51, %cst_18 [2] : vector<2x32x32xf32> to vector<2x32xf32>
    %53 = vector.shape_cast %41 : vector<2x32xf32> to vector<2x1x32xf32>
    %54 = vector.broadcast %53 : vector<2x1x32xf32> to vector<2x32x32xf32>
    %55 = arith.mulf %51, %54 : vector<2x32x32xf32>
    %cst_19 = arith.constant dense<0.000000e+00> : vector<2x32xf32>
    %56 = vector.multi_reduction <add>, %55, %cst_19 [2] : vector<2x32x32xf32> to vector<2x32xf32>
    %57 = tpu.reciprocal %52 {approx = true} : vector<2x32xf32> -> vector<2x32xf32>
    %58 = arith.mulf %56, %57 : vector<2x32xf32>
    %cst_20 = arith.constant dense<0.000000e+00> : vector<2x32xf32>
    %59 = tpu.matmul %58, %2, %cst_20 {dimension_numbers = #tpu.dot_dimension_numbers<[1], [0], [0], [1], [0, 0, 1, 1], [], []>} : vector<2x32xf32>, vector<32x32xf32>, vector<2x32xf32> -> vector<2x32xf32>
    %60 = vector.broadcast %3 : vector<1x32xf32> to vector<2x32xf32>
    %61 = arith.addf %59, %60 : vector<2x32xf32>
    %c0_21 = arith.constant 0 : index
    %c0_22 = arith.constant 0 : index
    %62 = vector.load %arg3[%c0_21, %c0_22] : memref<2x32xf32, #tpu.memory_space<vmem>>, vector<2x32xf32>
    %cst_23 = arith.constant dense<0.000000e+00> : vector<2x96xf32>
    %63 = tpu.matmul %61, %0, %cst_23 {dimension_numbers = #tpu.dot_dimension_numbers<[1], [0], [0], [1], [0, 0, 1, 1], [], []>} : vector<2x32xf32>, vector<32x96xf32>, vector<2x96xf32> -> vector<2x96xf32>
    %64 = vector.broadcast %1 : vector<1x96xf32> to vector<2x96xf32>
    %65 = arith.addf %63, %64 : vector<2x96xf32>
    %cst_24 = arith.constant dense<0.000000e+00> : vector<2x96xf32>
    %66 = tpu.matmul %62, %0, %cst_24 {dimension_numbers = #tpu.dot_dimension_numbers<[1], [0], [0], [1], [0, 0, 1, 1], [], []>} : vector<2x32xf32>, vector<32x96xf32>, vector<2x96xf32> -> vector<2x96xf32>
    %67 = vector.broadcast %1 : vector<1x96xf32> to vector<2x96xf32>
    %68 = arith.addf %66, %67 : vector<2x96xf32>
    %69 = vector.extract_strided_slice %65 {offsets = [0, 0], sizes = [2, 32], strides = [1, 1]} : vector<2x96xf32> to vector<2x32xf32>
    %70 = vector.extract_strided_slice %68 {offsets = [0, 32], sizes = [2, 32], strides = [1, 1]} : vector<2x96xf32> to vector<2x32xf32>
    %71 = vector.extract_strided_slice %68 {offsets = [0, 64], sizes = [2, 32], strides = [1, 1]} : vector<2x96xf32> to vector<2x32xf32>
    %72 = vector.shape_cast %69 : vector<2x32xf32> to vector<2x32x1xf32>
    %73 = vector.shape_cast %70 : vector<2x32xf32> to vector<2x1x32xf32>
    %74 = vector.broadcast %72 : vector<2x32x1xf32> to vector<2x32x32xf32>
    %75 = vector.broadcast %73 : vector<2x1x32xf32> to vector<2x32x32xf32>
    %76 = arith.mulf %74, %75 : vector<2x32x32xf32>
    %cst_25 = arith.constant dense<0xFF800000> : vector<2x32xf32>
    %77 = vector.multi_reduction <maximumf>, %76, %cst_25 [2] : vector<2x32x32xf32> to vector<2x32xf32>
    %78 = vector.shape_cast %77 : vector<2x32xf32> to vector<2x32x1xf32>
    %79 = vector.broadcast %78 : vector<2x32x1xf32> to vector<2x32x32xf32>
    %80 = arith.subf %76, %79 : vector<2x32x32xf32>
    %81 = math.exp %80 : vector<2x32x32xf32>
    %cst_26 = arith.constant dense<0.000000e+00> : vector<2x32xf32>
    %82 = vector.multi_reduction <add>, %81, %cst_26 [2] : vector<2x32x32xf32> to vector<2x32xf32>
    %83 = vector.shape_cast %71 : vector<2x32xf32> to vector<2x1x32xf32>
    %84 = vector.broadcast %83 : vector<2x1x32xf32> to vector<2x32x32xf32>
    %85 = arith.mulf %81, %84 : vector<2x32x32xf32>
    %cst_27 = arith.constant dense<0.000000e+00> : vector<2x32xf32>
    %86 = vector.multi_reduction <add>, %85, %cst_27 [2] : vector<2x32x32xf32> to vector<2x32xf32>
    %87 = tpu.reciprocal %82 {approx = true} : vector<2x32xf32> -> vector<2x32xf32>
    %88 = arith.mulf %86, %87 : vector<2x32xf32>
    %cst_28 = arith.constant dense<0.000000e+00> : vector<2x32xf32>
    %89 = tpu.matmul %88, %2, %cst_28 {dimension_numbers = #tpu.dot_dimension_numbers<[1], [0], [0], [1], [0, 0, 1, 1], [], []>} : vector<2x32xf32>, vector<32x32xf32>, vector<2x32xf32> -> vector<2x32xf32>
    %90 = vector.broadcast %3 : vector<1x32xf32> to vector<2x32xf32>
    %91 = arith.addf %89, %90 : vector<2x32xf32>
    %c0_29 = arith.constant 0 : index
    %c0_30 = arith.constant 0 : index
    %92 = vector.load %arg8[%c0_29, %c0_30] : memref<2x32xf32, #tpu.memory_space<vmem>>, vector<2x32xf32>
    tpu.vector_store %arg8[%c0_29, %c0_30], %91 {strides = array<i32>} : memref<2x32xf32, #tpu.memory_space<vmem>>, vector<2x32xf32>,
    return
  }
  func.func @transform_0(%arg0: i32) -> (i32, i32) {
    %c0_i32 = arith.constant 0 : i32
    %c0_i32_0 = arith.constant 0 : i32
    return %arg0, %c0_i32 : i32, i32
  }
  func.func @transform_1(%arg0: i32) -> (i32, i32) {
    %c0_i32 = arith.constant 0 : i32
    %c0_i32_0 = arith.constant 0 : i32
    return %arg0, %c0_i32 : i32, i32
  }
  func.func @transform_2(%arg0: i32) -> (i32, i32) {
    %c0_i32 = arith.constant 0 : i32
    %c0_i32_0 = arith.constant 0 : i32
    return %arg0, %c0_i32 : i32, i32
  }
  func.func @transform_3(%arg0: i32) -> (i32, i32) {
    %c0_i32 = arith.constant 0 : i32
    %c0_i32_0 = arith.constant 0 : i32
    %c0_i32_1 = arith.constant 0 : i32
    return %c0_i32, %c0_i32_0 : i32, i32
  }
  func.func @transform_4(%arg0: i32) -> (i32, i32) {
    %c0_i32 = arith.constant 0 : i32
    %c0_i32_0 = arith.constant 0 : i32
    %c0_i32_1 = arith.constant 0 : i32
    return %c0_i32, %c0_i32_0 : i32, i32
  }
  func.func @transform_5(%arg0: i32) -> (i32, i32) {
    %c0_i32 = arith.constant 0 : i32
    %c0_i32_0 = arith.constant 0 : i32
    %c0_i32_1 = arith.constant 0 : i32
    return %c0_i32, %c0_i32_0 : i32, i32
  }
  func.func @transform_6(%arg0: i32) -> (i32, i32) {
    %c0_i32 = arith.constant 0 : i32
    %c0_i32_0 = arith.constant 0 : i32
    %c0_i32_1 = arith.constant 0 : i32
    return %c0_i32, %c0_i32_0 : i32, i32
  }
  func.func @transform_7(%arg0: i32) -> (i32, i32) {
    %c0_i32 = arith.constant 0 : i32
    %c0_i32_0 = arith.constant 0 : i32
    return %arg0, %c0_i32 : i32, i32
  }
}

</mosaic_0001>

<bundles_post_ra>
// kernel: cross_attention_block.1
= control target key start
LH: loop header
LB: loop body
LE: loop exit
PB: predicated region body
PF: predicated region fallthrough
CT: control target
= control target key end

     0   :  { %12 = vsyncpa [#allocation3], 0  ;;  %s2430_s0 = inlined_call_operand.hbm [shape: f32[2,32], index: 0, kind: input, shape index: {}]   ;;  %s2431_s1 = inlined_call_operand.hbm [shape: f32[2,32], index: 1, kind: input, shape index: {}]   ;;  %s2432_s2 = inlined_call_operand.vmem [shape: f32[2,32], index: 2, kind: input, shape index: {}]   ;;  %s2433_s3 = inlined_call_operand.hbm [shape: f32[32,96], index: 3, kind: input, shape index: {}]   ;;  %s2434_s4 = inlined_call_operand.vmem [shape: f32[1,96], index: 4, kind: input, shape index: {}]   ;;  %s2435_s5 = inlined_call_operand.hbm [shape: f32[32,32], index: 5, kind: input, shape index: {}]   ;;  %s2436_s6 = inlined_call_operand.vmem [shape: f32[1,32], index: 6, kind: input, shape index: {}]   ;;  %s2437_s7 = inlined_call_operand.hbm [shape: f32[2,32], index: 7, kind: output, shape index: {}]  }
   0x1   :  { %13 = vsyncpa [#allocation6], 0 }
   0x2   :  { %14 = vsyncpa [#allocation9], 0 }
   0x3   :  { %15 = vsyncpa [#allocation4], 0  ;;  %s2021_s24 = smov [#allocation5]   ;;  %s2022_s26 = smov [#allocation2]  }
   0x4   :  { %s32_s25 = sshll.u32 %s2021_s24, 4  ;;  %s22_s27 = sshll.u32 %s2022_s26, 4  ;;  %s33_s25 = int_to_ptr.vmem [resolvable:$true] %s32_s25  ;;  %s23_s27 = int_to_ptr.vmem [resolvable:$true] %s22_s27 }
   0x5   :  { %s1921_s28 = scalar_lea.vmem %s33_s25, 32  ;;  %p1926_p1 = scmp.lt.s32.totalorder %s33_s25, %s33_s25 }
   0x6   :  { %p1922_p0 = scmp.ne.s32.totalorder %s33_s25, %s1921_s28  ;;  %p1927_p2 = scmp.lt.s32.totalorder %s1921_s28, %s1921_s28 }
   0x8   :  { %p1928_p3 = por %p1927_p2, %p1926_p1 }
   0xa   :  { %p1929_p4 = pnand %p1928_p3, %p1922_p0 }
   0xc   :  { %1932 = shalt.err (!%p1929_p4)
}
   0xd   :  { %35 = dma.hbm_to_vmem [thread:$0]  %s2431_s1, 32, %s33_s25, [#allocation6]  }
   0xe   :  { %s1941_s8 = scalar_lea.vmem %s23_s27, 32  ;;  %p1946_p6 = scmp.lt.s32.totalorder %s23_s27, %s23_s27 }
   0xf   :  { %p1942_p5 = scmp.ne.s32.totalorder %s23_s27, %s1941_s8  ;;  %p1947_p7 = scmp.lt.s32.totalorder %s1941_s8, %s1941_s8 }
  0x11   :  { %p1948_p8 = por %p1947_p7, %p1946_p6 }
  0x13   :  { %p1949_p9 = pnand %p1948_p8, %p1942_p5 }
  0x15   :  { %1952 = shalt.err (!%p1949_p9)
}
  0x16   :  { %25 = dma.hbm_to_vmem [thread:$0]  %s2430_s0, 32, %s23_s27, [#allocation3]  }
  0x17   :  { %s2023_s11 = smov [#allocation7]  }
  0x18   :  { %s43_s12 = sshll.u32 %s2023_s11, 4  ;;  %s44_s12 = int_to_ptr.vmem [resolvable:$true] %s43_s12 }
  0x19   :  { %s1961_s13 = scalar_lea.vmem %s44_s12, 512  ;;  %p1966_p11 = scmp.lt.s32.totalorder %s44_s12, %s44_s12 }
  0x1a   :  { %p1962_p10 = scmp.ne.s32.totalorder %s44_s12, %s1961_s13  ;;  %p1967_p12 = scmp.lt.s32.totalorder %s1961_s13, %s1961_s13 }
  0x1c   :  { %p1968_p13 = por %p1967_p12, %p1966_p11 }
  0x1e   :  { %p1969_p0 = pnand %p1968_p13, %p1962_p10 }
  0x20   :  { %1972 = shalt.err (!%p1969_p0)
}
  0x21   :  { %s2024_s1 = smov 128   ;;  %s2025_s14 = smov 8  }
  0x22   :  { %49 = dma.hbm_to_vmem [thread:$0]  %s2433_s3, 512, %s44_s12, [#allocation6], %s2024_s1, %s2024_s1, %s2025_s14  }
  0x23   :  { %s2026_s17 = smov [#allocation8]  }
  0x24   :  { %s57_s18 = sshll.u32 %s2026_s17, 4  ;;  %s58_s18 = int_to_ptr.vmem [resolvable:$true] %s57_s18 }
  0x25   :  { %s1981_s0 = scalar_lea.vmem %s58_s18, 512  ;;  %p1986_p2 = scmp.lt.s32.totalorder %s58_s18, %s58_s18 }
  0x26   :  { %p1982_p1 = scmp.ne.s32.totalorder %s58_s18, %s1981_s0  ;;  %p1987_p3 = scmp.lt.s32.totalorder %s1981_s0, %s1981_s0 }
  0x28   :  { %p1988_p4 = por %p1987_p3, %p1986_p2 }
  0x2a   :  { %p1989_p5 = pnand %p1988_p4, %p1982_p1 }
  0x2c   :  { %1992 = shalt.err (!%p1989_p5)
}
  0x2d   :  { %63 = dma.hbm_to_vmem [thread:$0]  %s2435_s5, 512, %s58_s18, [#allocation9], %s2024_s1, %s2024_s1, %s2025_s14  }
  0x2e   :  { %2013 = dma.done.wait [#allocation3], 32  }
  0x2f   :  { %2014 = vsyncadd [#allocation3], 4294967264 }
  0x30   :  { %2015 = dma.done.wait [#allocation6], 544  }
  0x31   :  { %2016 = vsyncadd [#allocation6], 4294966752 }
  0x32   :  { %2017 = dma.done.wait [#allocation9], 512  }
  0x33   :  { %2018 = vsyncadd [#allocation9], 4294966784  ;;  %v2027_v0 = vmov 0.0   ;;  %vm2028_vm0 = vmmov 0   ;;  %v2090_v1 = vld [vmem:[#allocation7 + $0x18] sm:$0xff]  ;;  %v2092_v2 = vld [vmem:[#allocation7 + $0x10] sm:$0xff]  ;;  %v243_v7 = vlaneseq }
  0x34   :  { %1713 = vmatprep.subr.mxu0 %v2027_v0  ;;  %1721 = vmatprep.mubr.msk.f32.mxu0 %vm2028_vm0, %v2027_v0  ;;  %v2097_v3 = vld [vmem:[#allocation7 + $0x8] sm:$0xff]  ;;  %v2103_v4 = vld [vmem:[#allocation7] sm:$0xff]  ;;  %v89_v5 = vld [vmem:[#allocation5] sm:$0x3]  ;;  %vm96_vm1 = vcmask 261120   ;;  %vm322_vm2 = vcmask 523520  }
  0x35   :  { %1724 = vmatprep.subr.mxu1 %v2027_v0  ;;  %1732 = vmatprep.mubr.msk.f32.mxu1 %vm2028_vm0, %v2027_v0  ;;  %v2108_v6 = vld [vmem:[#allocation2] sm:$0x3]  ;;  %v2132_v8 = vshrl.u32 %v243_v7, 7  ;;  %v2029_v19 = vmov 1966171168   ;;  %s2030_s21 = smov 96  }
  0x36   :  { %1714 = vmatpush3.msra.mxu0 %v2090_v1  ;;  %1725 = vmatpush3.msra.mxu1 %v2090_v1  ;;  %v2137_v9 = vld [vmem:[%s2434_s4] ss:$0 sm:$0xff]  ;;  %v283_v20 = vunpack.c.l.s4 %v2029_v19  ;;  %vm538_vm3 = vcmask 130112   ;;  %vm545_vm4 = vcmask 195712   ;;  %vm552_vm5 = vcmask 261312  }
  0x37   :  { %1715 = vmatprep.subr.mxu0 %v2027_v0  ;;  %1726 = vmatprep.subr.mxu1 %v2027_v0  ;;  %v2140_v10 = vsub.s32 0, %v2132_v8  ;;  %v2143_v11 = vsub.s32 1, %v2132_v8  ;;  %vm573_vm6 = vcmask 1041409   ;;  %vm1644_vm7 = vcmask 254976  }
  0x38   :  { %1716 = vmatpush3.msra.mxu0 %v2092_v2  ;;  %1727 = vmatpush3.msra.mxu1 %v2092_v2  ;;  %v284_v21 = vunpack.c.0.s8 %v283_v20 }
  0x39   :  { %1717 = vmatprep.subr.mxu0 %v2027_v0  ;;  %1728 = vmatprep.subr.mxu1 %v2027_v0 }
  0x3a   :  { %1718 = vmatpush3.msra.mxu0 %v2097_v3  ;;  %1729 = vmatpush3.msra.mxu1 %v2097_v3  ;;  %v2150_v23 = vsub.s32 %v284_v21, %v2132_v8 }
  0x3b   :  { %1719 = vmatprep.subr.mxu0 %v2027_v0  ;;  %1730 = vmatprep.subr.mxu1 %v2027_v0 }
  0x3c   :  { %1720 = vmatpush3.msra.mxu0 %v2103_v4  ;;  %1731 = vmatpush3.msra.mxu1 %v2103_v4 }
  0x3d   :  { %1722 = vmatmul.mubr.msk.f32.vlgmr.msra.gmra.mxu0 %vm96_vm1, %v89_v5  ;;  %1733 = vmatmul.mubr.msk.f32.vlgmr.msra.gmra.mxu1 %vm96_vm1, %v2108_v6 }
  0x3e   :  { %1735 = vmatprep.subr.mxu0 %v2027_v0  ;;  %1743 = vmatprep.mubr.msk.f32.mxu0 %vm2028_vm0, %v2027_v0 }
  0x3f   :  { %1746 = vmatprep.subr.mxu1 %v2027_v0  ;;  %1754 = vmatprep.mubr.msk.f32.mxu1 %vm2028_vm0, %v2027_v0 }
  0x40   :  { %1747 = vmatpush3.msra.mxu1 %v2090_v1 }
  0x41   :  { %1748 = vmatprep.subr.mxu1 %v2027_v0 }
  0x42   :  { %1749 = vmatpush3.msra.mxu1 %v2092_v2 }
  0x43   :  { %1750 = vmatprep.subr.mxu1 %v2027_v0 }
  0x44   :  { %1751 = vmatpush3.msra.mxu1 %v2097_v3 }
  0x45   :  { %1752 = vmatprep.subr.mxu1 %v2027_v0 }
  0x46   :  { %1753 = vmatpush3.msra.mxu1 %v2103_v4 }
  0x47   :  { %1768 = vmatprep.subr.mxu1 %v2027_v0 }
  0xfd   :  { %v166_v12 = vpop.f32.mrf.mxu0  ;;  %v239_v13 = vpop.f32.mrf.mxu1 }
  0xfe   :  { %v167_v14 = vadd.f32 %v2137_v9, %v166_v12  ;;  %v240_v22 = vadd.f32 %v2137_v9, %v239_v13 }
  0xff   :  { %v1723_v15 = vpop.f32.mrf.mxu0  ;;  %v1734_v16 = vpop.f32.mrf.mxu1 }
 0x100   :  { %v246_v17 = vrot.slane %v167_v14, %v2140_v10  ;;  %v265_v18 = vrot.slane %v167_v14, %v2143_v11  ;;  %v288_v24 = vrot.slane %v240_v22, %v2150_v23 }
 0x102   :  { %267 = vbcast.lane.b32.xlu1 %v265_v18, 256  ;;  %248 = vbcast.lane.b32.xlu0 %v246_v17, 256  ;;  %v289_v25 = vcombine.high %v288_v24, %v288_v24  ;;  %v296_v26 = vrot.slane %v288_v24, %v2150_v23 }
 0x104   :  { %v303_v27 = vrot.slane %v289_v25, %v2150_v23  ;;  %v307_v28 = vrot.slane %v296_v26, %v2140_v10 }
 0x106   :  { %271 = vbcast.lane.b32.xlu1 %v265_v18, 264  ;;  %252 = vbcast.lane.b32.xlu0 %v246_v17, 264  ;;  %v311_v29 = vrot.slane %v303_v27, %v2140_v10 }
 0x10a   :  { %275 = vbcast.lane.b32.xlu1 %v265_v18, 272  ;;  %256 = vbcast.lane.b32.xlu0 %v246_v17, 272 }
 0x10e   :  { %279 = vbcast.lane.b32.xlu1 %v265_v18, 280  ;;  %260 = vbcast.lane.b32.xlu0 %v246_v17, 280 }
 0x174   :  { %v268_v30 = vpop.permute.xlu1 %267  ;;  %v249_v31 = vpop.permute.xlu0 %248 }
 0x175   :  { %v314_v32 = vmul.f32 %v307_v28, %v249_v31  ;;  %v318_v33 = vmul.f32 %v311_v29, %v268_v30 }
 0x177   :  { %v323_v34 = vsel %vm322_vm2, %v314_v32, -inf  ;;  %v335_v39 = vsel %vm322_vm2, %v318_v33, -inf }
 0x178   :  { %v272_v35 = vpop.permute.xlu1 %271  ;;  %324 = vmax.xlane.f32.xlu0 %v323_v34  ;;  %v253_v36 = vpop.permute.xlu0 %252 }
 0x179   :  { %v315_v37 = vmul.f32 %v307_v28, %v253_v36  ;;  %v319_v38 = vmul.f32 %v311_v29, %v272_v35 }
 0x17b   :  { %v326_v40 = vsel %vm322_vm2, %v315_v37, -inf  ;;  %v338_v45 = vsel %vm322_vm2, %v319_v38, -inf }
 0x17c   :  { %v276_v41 = vpop.permute.xlu1 %275  ;;  %336 = vmax.xlane.f32.xlu0 %v335_v39  ;;  %327 = vmax.xlane.f32.xlu1 %v326_v40  ;;  %v257_v42 = vpop.permute.xlu0 %256 }
 0x17d   :  { %v316_v43 = vmul.f32 %v307_v28, %v257_v42  ;;  %v320_v44 = vmul.f32 %v311_v29, %v276_v41 }
 0x17f   :  { %v329_v46 = vsel %vm322_vm2, %v316_v43, -inf  ;;  %v341_v51 = vsel %vm322_vm2, %v320_v44, -inf }
 0x180   :  { %v280_v47 = vpop.permute.xlu1 %279  ;;  %339 = vmax.xlane.f32.xlu0 %v338_v45  ;;  %330 = vmax.xlane.f32.xlu1 %v329_v46  ;;  %v261_v48 = vpop.permute.xlu0 %260 }
 0x181   :  { %v317_v49 = vmul.f32 %v307_v28, %v261_v48  ;;  %v321_v50 = vmul.f32 %v311_v29, %v280_v47 }
 0x183   :  { %v332_v52 = vsel %vm322_vm2, %v317_v49, -inf  ;;  %v344_v53 = vsel %vm322_vm2, %v321_v50, -inf }
 0x184   :  { %342 = vmax.xlane.f32.xlu0 %v341_v51  ;;  %333 = vmax.xlane.f32.xlu1 %v332_v52 }
 0x188   :  { %345 = vmax.xlane.f32.xlu0 %v344_v53 }
 0x195   :  { %427 = vrot.lane.b32.xlu1 %v307_v28, %s2030_s21 }
 0x19e   :  { %429 = vrot.lane.b32.xlu0 %v311_v29, %s2030_s21 }
 0x201   :  { %v325_v54 = vpop.xlane.xlu0 %324 }
 0x202   :  { %v347_v55 = vsub.f32 %v314_v32, %v325_v54 }
 0x204   :  { %v355_v56 = vmul.f32 1.442695, %v347_v55 }
 0x205   :  { %v328_v57 = vpop.xlane.xlu1 %327  ;;  %v337_v58 = vpop.xlane.xlu0 %336 }
 0x206   :  { %1812 = vpow2.f32 %v355_v56  ;;  %v348_v59 = vsub.f32 %v315_v37, %v328_v57  ;;  %v351_v60 = vsub.f32 %v318_v33, %v337_v58 }
 0x208   :  { %v357_v61 = vmul.f32 1.442695, %v348_v59  ;;  %v363_v62 = vmul.f32 1.442695, %v351_v60 }
 0x209   :  { %v331_v63 = vpop.xlane.xlu1 %330  ;;  %v340_v5 = vpop.xlane.xlu0 %339 }
 0x20a   :  { %1814 = vpow2.f32 %v357_v61  ;;  %v349_v12 = vsub.f32 %v316_v43, %v331_v63  ;;  %v352_v13 = vsub.f32 %v319_v38, %v340_v5 }
 0x20b   :  { %1816 = vpow2.f32 %v363_v62 }
 0x20c   :  { %v359_v14 = vmul.f32 1.442695, %v349_v12  ;;  %v365_v15 = vmul.f32 1.442695, %v352_v13 }
 0x20d   :  { %v334_v16 = vpop.xlane.xlu1 %333  ;;  %v343_v17 = vpop.xlane.xlu0 %342 }
 0x20e   :  { %1818 = vpow2.f32 %v359_v14  ;;  %v350_v18 = vsub.f32 %v317_v49, %v334_v16  ;;  %v353_v19 = vsub.f32 %v320_v44, %v343_v17 }
 0x20f   :  { %1820 = vpow2.f32 %v365_v15 }
 0x210   :  { %v361_v20 = vmul.f32 1.442695, %v350_v18  ;;  %v367_v21 = vmul.f32 1.442695, %v353_v19 }
 0x211   :  { %v346_v22 = vpop.xlane.xlu0 %345  ;;  %v428_v33 = vpop.permute.xlu1 %427 }
 0x212   :  { %1822 = vpow2.f32 %v361_v20  ;;  %v354_v24 = vsub.f32 %v321_v50, %v346_v22 }
 0x213   :  { %v1813_v25 = vpop.eup %1812  ;;  %1824 = vpow2.f32 %v367_v21 }
 0x214   :  { %v369_v26 = vmul.f32 1.442695, %v354_v24  ;;  %379 = vrot.lane.b32.xlu1 %v1813_v25, %s2030_s21  ;;  %v433_v35 = vmul.f32 %v1813_v25, %v428_v33  ;;  %v2199_v24 = vld [vmem:[#allocation8 + $0x18] sm:$0xff]  ;;  %v2203_v25 = vld [vmem:[#allocation8 + $0x10] sm:$0xff] }
 0x215   :  { %v430_v36 = vpop.permute.xlu0 %429  ;;  %1736 = vmatpush3.msra.mxu0 %v2199_v24 }
 0x216   :  { %1826 = vpow2.f32 %v369_v26  ;;  %1737 = vmatprep.subr.mxu0 %v2027_v0  ;;  %v2206_v26 = vld [vmem:[#allocation8 + $0x8] sm:$0xff] }
 0x217   :  { %v1815_v27 = vpop.eup %1814  ;;  %1738 = vmatpush3.msra.mxu0 %v2203_v25 }
 0x218   :  { %v1817_v28 = vpop.eup %1816  ;;  %381 = vrot.lane.b32.xlu1 %v1815_v27, %s2030_s21  ;;  %v434_v37 = vmul.f32 %v1815_v27, %v428_v33  ;;  %1739 = vmatprep.subr.mxu0 %v2027_v0  ;;  %v2209_v27 = vld [vmem:[#allocation8] sm:$0xff] }
 0x219   :  { %387 = vrot.lane.b32.xlu0 %v1817_v28, %s2030_s21  ;;  %v437_v38 = vmul.f32 %v1817_v28, %v430_v36  ;;  %1740 = vmatpush3.msra.mxu0 %v2206_v26 }
 0x21a   :  { %1741 = vmatprep.subr.mxu0 %v2027_v0 }
 0x21b   :  { %v1819_v29 = vpop.eup %1818  ;;  %1742 = vmatpush3.msra.mxu0 %v2209_v27 }
 0x21c   :  { %v1821_v30 = vpop.eup %1820  ;;  %v435_v40 = vmul.f32 %v1819_v29, %v428_v33  ;;  %1757 = vmatprep.subr.mxu0 %v2027_v0 }
 0x21d   :  { %383 = vrot.lane.b32.xlu0 %v1819_v29, %s2030_s21  ;;  %389 = vrot.lane.b32.xlu1 %v1821_v30, %s2030_s21  ;;  %v438_v39 = vmul.f32 %v1821_v30, %v430_v36 }
 0x21f   :  { %v1823_v31 = vpop.eup %1822 }
 0x220   :  { %v1825_v32 = vpop.eup %1824  ;;  %v436_v42 = vmul.f32 %v1823_v31, %v428_v33 }
 0x221   :  { %385 = vrot.lane.b32.xlu0 %v1823_v31, %s2030_s21  ;;  %391 = vrot.lane.b32.xlu1 %v1825_v32, %s2030_s21  ;;  %v439_v41 = vmul.f32 %v1825_v32, %v430_v36 }
 0x223   :  { %v1827_v34 = vpop.eup %1826 }
 0x224   :  { %v440_v43 = vmul.f32 %v1827_v34, %v430_v36 }
 0x225   :  { %449 = vrot.lane.b32.xlu0 %v433_v35, %s2030_s21  ;;  %393 = vrot.lane.b32.xlu1 %v1827_v34, %s2030_s21 }
 0x229   :  { %451 = vrot.lane.b32.xlu1 %v434_v37, %s2030_s21  ;;  %457 = vrot.lane.b32.xlu0 %v437_v38, %s2030_s21 }
 0x22d   :  { %459 = vrot.lane.b32.xlu1 %v438_v39, %s2030_s21  ;;  %453 = vrot.lane.b32.xlu0 %v435_v40, %s2030_s21  ;;  %v528_v39 = vand.u32 127, %v243_v7 }
 0x231   :  { %461 = vrot.lane.b32.xlu1 %v439_v41, %s2030_s21  ;;  %455 = vrot.lane.b32.xlu0 %v436_v42, %s2030_s21  ;;  %v533_v42 = vadd.s32 4294967288, %v528_v39 }
 0x235   :  { %463 = vrot.lane.b32.xlu1 %v440_v43, %s2030_s21 }
 0x286   :  { %v380_v44 = vpop.permute.xlu1 %379 }
 0x287   :  { %v403_v45 = vsel %vm96_vm1, %v380_v44, 0.0  ;;  %v540_v44 = vadd.s32 4294967280, %v528_v39 }
 0x288   :  { %404 = vadd.xlane.f32.xlu0 %v403_v45 }
 0x289   :  { %v2223_v7 = vsub.s32 %v540_v44, %v2132_v8 }
 0x28a   :  { %v382_v46 = vpop.permute.xlu1 %381 }
 0x28b   :  { %v388_v47 = vpop.permute.xlu0 %387  ;;  %v406_v48 = vsel %vm96_vm1, %v382_v46, 0.0 }
 0x28c   :  { %407 = vadd.xlane.f32.xlu1 %v406_v48  ;;  %v415_v49 = vsel %vm96_vm1, %v388_v47, 0.0  ;;  %v547_v47 = vadd.s32 4294967272, %v528_v39 }
 0x28d   :  { %416 = vadd.xlane.f32.xlu0 %v415_v49 }
 0x28f   :  { %v390_v50 = vpop.permute.xlu1 %389  ;;  %v384_v51 = vpop.permute.xlu0 %383 }
 0x290   :  { %v418_v52 = vsel %vm96_vm1, %v390_v50, 0.0  ;;  %v409_v53 = vsel %vm96_vm1, %v384_v51, 0.0  ;;  %v2217_v51 = vsub.s32 %v533_v42, %v2132_v8 }
 0x291   :  { %419 = vadd.xlane.f32.xlu0 %v418_v52  ;;  %410 = vadd.xlane.f32.xlu1 %v409_v53 }
 0x293   :  { %v392_v54 = vpop.permute.xlu1 %391  ;;  %v386_v55 = vpop.permute.xlu0 %385 }
 0x294   :  { %v421_v56 = vsel %vm96_vm1, %v392_v54, 0.0  ;;  %v412_v57 = vsel %vm96_vm1, %v386_v55, 0.0  ;;  %v2220_v55 = vsub.s32 %v528_v39, %v2132_v8 }
 0x295   :  { %422 = vadd.xlane.f32.xlu0 %v421_v56  ;;  %413 = vadd.xlane.f32.xlu1 %v412_v57  ;;  %v2226_v57 = vsub.s32 %v547_v47, %v2132_v8 }
 0x297   :  { %v394_v58 = vpop.permute.xlu1 %393  ;;  %v450_v59 = vpop.permute.xlu0 %449 }
 0x298   :  { %v424_v60 = vsel %vm96_vm1, %v394_v58, 0.0  ;;  %v473_v61 = vsel %vm96_vm1, %v450_v59, 0.0 }
 0x299   :  { %425 = vadd.xlane.f32.xlu0 %v424_v60  ;;  %474 = vadd.xlane.f32.xlu1 %v473_v61 }
 0x29b   :  { %v452_v62 = vpop.permute.xlu1 %451  ;;  %v458_v63 = vpop.permute.xlu0 %457 }
 0x29c   :  { %v476_v5 = vsel %vm96_vm1, %v452_v62, 0.0  ;;  %v485_v12 = vsel %vm96_vm1, %v458_v63, 0.0 }
 0x29d   :  { %477 = vadd.xlane.f32.xlu0 %v476_v5  ;;  %486 = vadd.xlane.f32.xlu1 %v485_v12 }
 0x29f   :  { %v460_v13 = vpop.permute.xlu1 %459  ;;  %v454_v14 = vpop.permute.xlu0 %453 }
 0x2a0   :  { %v488_v15 = vsel %vm96_vm1, %v460_v13, 0.0  ;;  %v479_v16 = vsel %vm96_vm1, %v454_v14, 0.0 }
 0x2a1   :  { %489 = vadd.xlane.f32.xlu0 %v488_v15  ;;  %480 = vadd.xlane.f32.xlu1 %v479_v16 }
 0x2a3   :  { %v462_v17 = vpop.permute.xlu1 %461  ;;  %v456_v18 = vpop.permute.xlu0 %455 }
 0x2a4   :  { %v491_v19 = vsel %vm96_vm1, %v462_v17, 0.0  ;;  %v482_v20 = vsel %vm96_vm1, %v456_v18, 0.0 }
 0x2a5   :  { %492 = vadd.xlane.f32.xlu0 %v491_v19  ;;  %483 = vadd.xlane.f32.xlu1 %v482_v20 }
 0x2a7   :  { %v464_v21 = vpop.permute.xlu1 %463 }
 0x2a8   :  { %v494_v22 = vsel %vm96_vm1, %v464_v21, 0.0 }
 0x2a9   :  { %495 = vadd.xlane.f32.xlu0 %v494_v22 }
 0x311   :  { %v405_v28 = vpop.xlane.xlu0 %404 }
 0x312   :  { %1828 = vrcp.f32 %v405_v28 }
 0x315   :  { %v408_v29 = vpop.xlane.xlu1 %407 }
 0x316   :  { %v417_v30 = vpop.xlane.xlu0 %416  ;;  %1830 = vrcp.f32 %v408_v29 }
 0x317   :  { %1832 = vrcp.f32 %v417_v30 }
 0x31a   :  { %v411_v31 = vpop.xlane.xlu1 %410  ;;  %v420_v32 = vpop.xlane.xlu0 %419 }
 0x31b   :  { %1834 = vrcp.f32 %v411_v31 }
 0x31c   :  { %1836 = vrcp.f32 %v420_v32 }
 0x31e   :  { %v414_v33 = vpop.xlane.xlu1 %413  ;;  %v423_v34 = vpop.xlane.xlu0 %422 }
 0x31f   :  { %1838 = vrcp.f32 %v414_v33  ;;  %v1829_v40 = vpop.eup %1828  ;;  %v2257_v33 = vld [vmem:[%s2436_s6] ss:$0 sm:$0xff] }
 0x320   :  { %1840 = vrcp.f32 %v423_v34 }
 0x322   :  { %v475_v35 = vpop.xlane.xlu1 %474  ;;  %v426_v36 = vpop.xlane.xlu0 %425 }
 0x323   :  { %1842 = vrcp.f32 %v426_v36  ;;  %v1831_v41 = vpop.eup %1830  ;;  %v505_v60 = vmul.f32 %v1829_v40, %v475_v35 }
 0x324   :  { %v1833_v43 = vpop.eup %1832 }
 0x325   :  { %v532_v8 = vrot.slane %v505_v60, %v2220_v55 }
 0x326   :  { %v487_v37 = vpop.xlane.xlu1 %486  ;;  %v478_v38 = vpop.xlane.xlu0 %477 }
 0x327   :  { %v506_v52 = vmul.f32 %v1831_v41, %v478_v38  ;;  %v509_v61 = vmul.f32 %v1833_v43, %v487_v37 }
 0x328   :  { %v1835_v48 = vpop.eup %1834 }
 0x329   :  { %v1837_v49 = vpop.eup %1836  ;;  %v537_v5 = vrot.slane %v506_v52, %v2217_v51  ;;  %v557_v17 = vrot.slane %v509_v61, %v2220_v55 }
 0x32a   :  { %v481_v45 = vpop.xlane.xlu1 %480  ;;  %v490_v46 = vpop.xlane.xlu0 %489 }
 0x32b   :  { %v510_v53 = vmul.f32 %v1837_v49, %v490_v46  ;;  %v507_v56 = vmul.f32 %v1835_v48, %v481_v45  ;;  %v539_v20 = vsel %vm538_vm3, %v537_v5, %v532_v8 }
 0x32c   :  { %v1839_v50 = vpop.eup %1838 }
 0x32d   :  { %v1841_v54 = vpop.eup %1840  ;;  %v561_v12 = vrot.slane %v510_v53, %v2217_v51  ;;  %v544_v14 = vrot.slane %v507_v56, %v2223_v7 }
 0x32e   :  { %v484_v58 = vpop.xlane.xlu1 %483  ;;  %v493_v59 = vpop.xlane.xlu0 %492 }
 0x32f   :  { %v508_v62 = vmul.f32 %v1839_v50, %v484_v58  ;;  %v511_v63 = vmul.f32 %v1841_v54, %v493_v59  ;;  %v562_v21 = vsel %vm538_vm3, %v561_v12, %v557_v17  ;;  %v546_v28 = vsel %vm545_vm4, %v544_v14, %v539_v20 }
 0x330   :  { %v1843_v13 = vpop.eup %1842 }
 0x331   :  { %v566_v15 = vrot.slane %v511_v63, %v2223_v7  ;;  %v551_v18 = vrot.slane %v508_v62, %v2226_v57 }
 0x332   :  { %v496_v16 = vpop.xlane.xlu0 %495 }
 0x333   :  { %v512_v19 = vmul.f32 %v1843_v13, %v496_v16  ;;  %v567_v29 = vsel %vm545_vm4, %v566_v15, %v562_v21  ;;  %v553_v30 = vsel %vm552_vm5, %v551_v18, %v546_v28 }
 0x335   :  { %v571_v22 = vrot.slane %v512_v19, %v2226_v57 }
 0x337   :  { %v572_v31 = vsel %vm552_vm5, %v571_v22, %v567_v29 }
 0x338   :  { %v574_v32 = vsel %vm573_vm6, %v572_v31, %v553_v30 }
 0x339   :  { %1744 = vmatmul.mubr.msk.f32.vlgmr.msra.gmra.mxu0 %vm96_vm1, %v574_v32 }
 0x33a   :  { %1758 = vmatpush3.msra.mxu0 %v2199_v24  ;;  %1765 = vmatprep.mubr.msk.f32.mxu0 %vm2028_vm0, %v2027_v0 }
 0x33b   :  { %1759 = vmatprep.subr.mxu0 %v2027_v0 }
 0x33c   :  { %1760 = vmatpush3.msra.mxu0 %v2203_v25 }
 0x33d   :  { %1761 = vmatprep.subr.mxu0 %v2027_v0 }
 0x33e   :  { %1762 = vmatpush3.msra.mxu0 %v2206_v26 }
 0x33f   :  { %1763 = vmatprep.subr.mxu0 %v2027_v0 }
 0x340   :  { %1764 = vmatpush3.msra.mxu0 %v2209_v27 }
 0x341   :  { %1779 = vmatprep.subr.mxu0 %v2027_v0 }
 0x3f9   :  { %v643_v34 = vpop.f32.mrf.mxu0 }
 0x3fa   :  { %v644_v35 = vadd.f32 %v2257_v33, %v643_v34 }
 0x3fb   :  { %v1745_v36 = vpop.f32.mrf.mxu0 }
 0x3fc   :  { %v647_v37 = vadd.f32 %v644_v35, %v2108_v6 }
 0x3fe   :  { %1755 = vmatmul.mubr.msk.f32.vlgmr.msra.gmra.mxu1 %vm96_vm1, %v647_v37 }
 0x3ff   :  { %1769 = vmatpush3.msra.mxu1 %v2090_v1  ;;  %1776 = vmatprep.mubr.msk.f32.mxu1 %vm2028_vm0, %v2027_v0 }
 0x400   :  { %1770 = vmatprep.subr.mxu1 %v2027_v0 }
 0x401   :  { %1771 = vmatpush3.msra.mxu1 %v2092_v2 }
 0x402   :  { %1772 = vmatprep.subr.mxu1 %v2027_v0 }
 0x403   :  { %1773 = vmatpush3.msra.mxu1 %v2097_v3 }
 0x404   :  { %1774 = vmatprep.subr.mxu1 %v2027_v0 }
 0x405   :  { %1775 = vmatpush3.msra.mxu1 %v2103_v4 }
 0x406   :  { %1790 = vmatprep.subr.mxu1 %v2027_v0 }
 0x4be   :  { %v717_v6 = vpop.f32.mrf.mxu1 }
 0x4bf   :  { %v718_v1 = vadd.f32 %v2137_v9, %v717_v6 }
 0x4c0   :  { %v1756_v38 = vpop.f32.mrf.mxu1 }
 0x4c1   :  { %v724_v39 = vrot.slane %v718_v1, %v2140_v10  ;;  %v743_v2 = vrot.slane %v718_v1, %v2143_v11  ;;  %v766_v3 = vrot.slane %v718_v1, %v2150_v23 }
 0x4c3   :  { %730 = vbcast.lane.b32.xlu0 %v724_v39, 264  ;;  %726 = vbcast.lane.b32.xlu1 %v724_v39, 256  ;;  %v767_v4 = vcombine.high %v766_v3, %v766_v3  ;;  %v774_v40 = vrot.slane %v766_v3, %v2150_v23 }
 0x4c5   :  { %v781_v9 = vrot.slane %v767_v4, %v2150_v23  ;;  %v785_v41 = vrot.slane %v774_v40, %v2140_v10 }
 0x4c7   :  { %734 = vbcast.lane.b32.xlu0 %v724_v39, 272  ;;  %745 = vbcast.lane.b32.xlu1 %v743_v2, 256  ;;  %v789_v46 = vrot.slane %v781_v9, %v2140_v10 }
 0x4cb   :  { %738 = vbcast.lane.b32.xlu0 %v724_v39, 280  ;;  %749 = vbcast.lane.b32.xlu1 %v743_v2, 264 }
 0x4cf   :  { %753 = vbcast.lane.b32.xlu1 %v743_v2, 272 }
 0x4d3   :  { %757 = vbcast.lane.b32.xlu1 %v743_v2, 280 }
 0x535   :  { %v731_v42 = vpop.permute.xlu0 %730  ;;  %v727_v43 = vpop.permute.xlu1 %726 }
 0x536   :  { %v793_v44 = vmul.f32 %v785_v41, %v731_v42  ;;  %v792_v45 = vmul.f32 %v785_v41, %v727_v43 }
 0x538   :  { %v803_v47 = vsel %vm322_vm2, %v793_v44, -inf  ;;  %v800_v48 = vsel %vm322_vm2, %v792_v45, -inf }
 0x539   :  { %v735_v49 = vpop.permute.xlu0 %734  ;;  %804 = vmax.xlane.f32.xlu1 %v803_v47  ;;  %801 = vmax.xlane.f32.xlu0 %v800_v48  ;;  %v746_v50 = vpop.permute.xlu1 %745 }
 0x53a   :  { %v794_v52 = vmul.f32 %v785_v41, %v735_v49  ;;  %v796_v53 = vmul.f32 %v789_v46, %v746_v50 }
 0x53c   :  { %v806_v54 = vsel %vm322_vm2, %v794_v52, -inf  ;;  %v812_v56 = vsel %vm322_vm2, %v796_v53, -inf }
 0x53d   :  { %v739_v58 = vpop.permute.xlu0 %738  ;;  %807 = vmax.xlane.f32.xlu1 %v806_v54  ;;  %813 = vmax.xlane.f32.xlu0 %v812_v56  ;;  %v750_v59 = vpop.permute.xlu1 %749 }
 0x53e   :  { %v795_v60 = vmul.f32 %v785_v41, %v739_v58  ;;  %v797_v61 = vmul.f32 %v789_v46, %v750_v59 }
 0x540   :  { %v809_v62 = vsel %vm322_vm2, %v795_v60, -inf  ;;  %v815_v63 = vsel %vm322_vm2, %v797_v61, -inf }
 0x541   :  { %810 = vmax.xlane.f32.xlu1 %v809_v62  ;;  %816 = vmax.xlane.f32.xlu0 %v815_v63  ;;  %v754_v5 = vpop.permute.xlu1 %753 }
 0x542   :  { %v798_v12 = vmul.f32 %v789_v46, %v754_v5 }
 0x544   :  { %v818_v13 = vsel %vm322_vm2, %v798_v12, -inf }
 0x545   :  { %819 = vmax.xlane.f32.xlu0 %v818_v13  ;;  %v758_v14 = vpop.permute.xlu1 %757 }
 0x546   :  { %v799_v15 = vmul.f32 %v789_v46, %v758_v14 }
 0x548   :  { %v821_v16 = vsel %vm322_vm2, %v799_v15, -inf }
 0x549   :  { %822 = vmax.xlane.f32.xlu0 %v821_v16 }
 0x552   :  { %904 = vrot.lane.b32.xlu1 %v785_v41, %s2030_s21 }
 0x55f   :  { %906 = vrot.lane.b32.xlu0 %v789_v46, %s2030_s21 }
 0x5c2   :  { %v802_v8 = vpop.xlane.xlu0 %801  ;;  %v805_v17 = vpop.xlane.xlu1 %804 }
 0x5c3   :  { %v824_v18 = vsub.f32 %v792_v45, %v802_v8  ;;  %v825_v19 = vsub.f32 %v793_v44, %v805_v17 }
 0x5c5   :  { %v832_v20 = vmul.f32 1.442695, %v824_v18  ;;  %v834_v21 = vmul.f32 1.442695, %v825_v19 }
 0x5c6   :  { %v814_v22 = vpop.xlane.xlu0 %813  ;;  %v808_v28 = vpop.xlane.xlu1 %807 }
 0x5c7   :  { %1844 = vpow2.f32 %v832_v20  ;;  %v828_v29 = vsub.f32 %v796_v53, %v814_v22  ;;  %v826_v30 = vsub.f32 %v794_v52, %v808_v28 }
 0x5c8   :  { %1846 = vpow2.f32 %v834_v21 }
 0x5c9   :  { %v840_v31 = vmul.f32 1.442695, %v828_v29  ;;  %v836_v32 = vmul.f32 1.442695, %v826_v30 }
 0x5ca   :  { %v817_v34 = vpop.xlane.xlu0 %816  ;;  %v811_v35 = vpop.xlane.xlu1 %810 }
 0x5cb   :  { %1848 = vpow2.f32 %v840_v31  ;;  %v829_v36 = vsub.f32 %v797_v61, %v817_v34  ;;  %v827_v37 = vsub.f32 %v795_v60, %v811_v35 }
 0x5cc   :  { %1850 = vpow2.f32 %v836_v32 }
 0x5cd   :  { %v842_v6 = vmul.f32 1.442695, %v829_v36  ;;  %v838_v1 = vmul.f32 1.442695, %v827_v37 }
 0x5ce   :  { %v820_v38 = vpop.xlane.xlu0 %819  ;;  %v905_v47 = vpop.permute.xlu1 %904 }
 0x5cf   :  { %1852 = vpow2.f32 %v842_v6  ;;  %v830_v39 = vsub.f32 %v798_v12, %v820_v38 }
 0x5d0   :  { %1854 = vpow2.f32 %v838_v1 }
 0x5d1   :  { %v844_v2 = vmul.f32 1.442695, %v830_v39 }
 0x5d2   :  { %v823_v3 = vpop.xlane.xlu0 %822 }
 0x5d3   :  { %1856 = vpow2.f32 %v844_v2  ;;  %v831_v4 = vsub.f32 %v799_v15, %v823_v3 }
 0x5d4   :  { %v1845_v40 = vpop.eup %1844 }
 0x5d5   :  { %v846_v9 = vmul.f32 1.442695, %v831_v4  ;;  %856 = vrot.lane.b32.xlu1 %v1845_v40, %s2030_s21  ;;  %v1847_v41 = vpop.eup %1846  ;;  %v910_v48 = vmul.f32 %v1845_v40, %v905_v47 }
 0x5d6   :  { %v907_v50 = vpop.permute.xlu0 %906  ;;  %v911_v52 = vmul.f32 %v1847_v41, %v905_v47 }
 0x5d7   :  { %1858 = vpow2.f32 %v846_v9 }
 0x5d8   :  { %v1849_v42 = vpop.eup %1848 }
 0x5d9   :  { %864 = vrot.lane.b32.xlu0 %v1849_v42, %s2030_s21  ;;  %858 = vrot.lane.b32.xlu1 %v1847_v41, %s2030_s21  ;;  %v1851_v43 = vpop.eup %1850  ;;  %v914_v53 = vmul.f32 %v1849_v42, %v907_v50 }
 0x5da   :  { %v912_v56 = vmul.f32 %v1851_v43, %v905_v47 }
 0x5dc   :  { %v1853_v44 = vpop.eup %1852 }
 0x5dd   :  { %866 = vrot.lane.b32.xlu1 %v1853_v44, %s2030_s21  ;;  %860 = vrot.lane.b32.xlu0 %v1851_v43, %s2030_s21  ;;  %v1855_v45 = vpop.eup %1854  ;;  %v915_v54 = vmul.f32 %v1853_v44, %v907_v50 }
 0x5de   :  { %v913_v59 = vmul.f32 %v1855_v45, %v905_v47 }
 0x5e0   :  { %v1857_v46 = vpop.eup %1856 }
 0x5e1   :  { %868 = vrot.lane.b32.xlu1 %v1857_v46, %s2030_s21  ;;  %862 = vrot.lane.b32.xlu0 %v1855_v45, %s2030_s21  ;;  %v916_v58 = vmul.f32 %v1857_v46, %v907_v50 }
 0x5e4   :  { %v1859_v49 = vpop.eup %1858 }
 0x5e5   :  { %870 = vrot.lane.b32.xlu1 %v1859_v49, %s2030_s21  ;;  %926 = vrot.lane.b32.xlu0 %v910_v48, %s2030_s21  ;;  %v917_v60 = vmul.f32 %v1859_v49, %v907_v50 }
 0x5e9   :  { %928 = vrot.lane.b32.xlu1 %v911_v52, %s2030_s21  ;;  %934 = vrot.lane.b32.xlu0 %v914_v53, %s2030_s21 }
 0x5ed   :  { %936 = vrot.lane.b32.xlu1 %v915_v54, %s2030_s21  ;;  %930 = vrot.lane.b32.xlu0 %v912_v56, %s2030_s21 }
 0x5f1   :  { %938 = vrot.lane.b32.xlu1 %v916_v58, %s2030_s21  ;;  %932 = vrot.lane.b32.xlu0 %v913_v59, %s2030_s21 }
 0x5f5   :  { %940 = vrot.lane.b32.xlu1 %v917_v60, %s2030_s21 }
 0x647   :  { %v857_v61 = vpop.permute.xlu1 %856 }
 0x648   :  { %v880_v62 = vsel %vm96_vm1, %v857_v61, 0.0 }
 0x649   :  { %881 = vadd.xlane.f32.xlu0 %v880_v62 }
 0x64b   :  { %v865_v63 = vpop.permute.xlu0 %864  ;;  %v859_v5 = vpop.permute.xlu1 %858 }
 0x64c   :  { %v892_v12 = vsel %vm96_vm1, %v865_v63, 0.0  ;;  %v883_v13 = vsel %vm96_vm1, %v859_v5, 0.0 }
 0x64d   :  { %893 = vadd.xlane.f32.xlu0 %v892_v12  ;;  %884 = vadd.xlane.f32.xlu1 %v883_v13 }
 0x64f   :  { %v861_v14 = vpop.permute.xlu0 %860  ;;  %v867_v15 = vpop.permute.xlu1 %866 }
 0x650   :  { %v886_v16 = vsel %vm96_vm1, %v861_v14, 0.0  ;;  %v895_v8 = vsel %vm96_vm1, %v867_v15, 0.0 }
 0x651   :  { %887 = vadd.xlane.f32.xlu1 %v886_v16  ;;  %896 = vadd.xlane.f32.xlu0 %v895_v8 }
 0x653   :  { %v863_v17 = vpop.permute.xlu0 %862  ;;  %v869_v18 = vpop.permute.xlu1 %868 }
 0x654   :  { %v889_v19 = vsel %vm96_vm1, %v863_v17, 0.0  ;;  %v898_v20 = vsel %vm96_vm1, %v869_v18, 0.0 }
 0x655   :  { %890 = vadd.xlane.f32.xlu1 %v889_v19  ;;  %899 = vadd.xlane.f32.xlu0 %v898_v20 }
 0x657   :  { %v927_v21 = vpop.permute.xlu0 %926  ;;  %v871_v22 = vpop.permute.xlu1 %870 }
 0x658   :  { %v950_v28 = vsel %vm96_vm1, %v927_v21, 0.0  ;;  %v901_v29 = vsel %vm96_vm1, %v871_v22, 0.0 }
 0x659   :  { %951 = vadd.xlane.f32.xlu1 %v950_v28  ;;  %902 = vadd.xlane.f32.xlu0 %v901_v29 }
 0x65b   :  { %v935_v30 = vpop.permute.xlu0 %934  ;;  %v929_v31 = vpop.permute.xlu1 %928 }
 0x65c   :  { %v962_v32 = vsel %vm96_vm1, %v935_v30, 0.0  ;;  %v953_v34 = vsel %vm96_vm1, %v929_v31, 0.0 }
 0x65d   :  { %963 = vadd.xlane.f32.xlu1 %v962_v32  ;;  %954 = vadd.xlane.f32.xlu0 %v953_v34 }
 0x65f   :  { %v931_v35 = vpop.permute.xlu0 %930  ;;  %v937_v36 = vpop.permute.xlu1 %936 }
 0x660   :  { %v956_v37 = vsel %vm96_vm1, %v931_v35, 0.0  ;;  %v965_v6 = vsel %vm96_vm1, %v937_v36, 0.0 }
 0x661   :  { %957 = vadd.xlane.f32.xlu1 %v956_v37  ;;  %966 = vadd.xlane.f32.xlu0 %v965_v6 }
 0x663   :  { %v933_v1 = vpop.permute.xlu0 %932  ;;  %v939_v38 = vpop.permute.xlu1 %938 }
 0x664   :  { %v968_v39 = vsel %vm96_vm1, %v939_v38, 0.0  ;;  %v959_v2 = vsel %vm96_vm1, %v933_v1, 0.0 }
 0x665   :  { %960 = vadd.xlane.f32.xlu1 %v959_v2  ;;  %969 = vadd.xlane.f32.xlu0 %v968_v39  ;;  %v1908_v39 = vld [vmem:[#allocation7 + $0x18] sm:$0xff]  ;;  %v1909_v2 = vld [vmem:[#allocation7 + $0x10] sm:$0xff] }
 0x667   :  { %v941_v3 = vpop.permute.xlu1 %940 }
 0x668   :  { %v971_v4 = vsel %vm96_vm1, %v941_v3, 0.0  ;;  %v1910_v3 = vld [vmem:[#allocation7 + $0x8] sm:$0xff] }
 0x669   :  { %972 = vadd.xlane.f32.xlu0 %v971_v4  ;;  %v1911_v4 = vld [vmem:[#allocation7] sm:$0xff] }
 0x6d2   :  { %v882_v40 = vpop.xlane.xlu0 %881 }
 0x6d3   :  { %1860 = vrcp.f32 %v882_v40  ;;  %v1109_v40 = vld [vmem:[%s2432_s2] sm:$0x3] }
 0x6d6   :  { %v894_v9 = vpop.xlane.xlu0 %893  ;;  %v885_v41 = vpop.xlane.xlu1 %884 }
 0x6d7   :  { %1862 = vrcp.f32 %v894_v9 }
 0x6d8   :  { %1864 = vrcp.f32 %v885_v41 }
 0x6da   :  { %v897_v42 = vpop.xlane.xlu0 %896  ;;  %v888_v43 = vpop.xlane.xlu1 %887 }
 0x6db   :  { %1866 = vrcp.f32 %v897_v42 }
 0x6dc   :  { %1868 = vrcp.f32 %v888_v43 }
 0x6de   :  { %v900_v44 = vpop.xlane.xlu0 %899  ;;  %v891_v45 = vpop.xlane.xlu1 %890 }
 0x6df   :  { %1870 = vrcp.f32 %v900_v44 }
 0x6e0   :  { %1872 = vrcp.f32 %v891_v45  ;;  %v1861_v50 = vpop.eup %1860 }
 0x6e2   :  { %v903_v46 = vpop.xlane.xlu0 %902  ;;  %v952_v47 = vpop.xlane.xlu1 %951 }
 0x6e3   :  { %1874 = vrcp.f32 %v903_v46  ;;  %v982_v14 = vmul.f32 %v1861_v50, %v952_v47 }
 0x6e4   :  { %v1863_v52 = vpop.eup %1862 }
 0x6e5   :  { %v1865_v53 = vpop.eup %1864  ;;  %v1001_v28 = vrot.slane %v982_v14, %v2220_v55 }
 0x6e6   :  { %v955_v48 = vpop.xlane.xlu0 %954  ;;  %v964_v49 = vpop.xlane.xlu1 %963 }
 0x6e7   :  { %v983_v61 = vmul.f32 %v1865_v53, %v955_v48  ;;  %v986_v15 = vmul.f32 %v1863_v52, %v964_v49 }
 0x6e8   :  { %v1867_v58 = vpop.eup %1866 }
 0x6e9   :  { %v1869_v59 = vpop.eup %1868  ;;  %v1005_v17 = vrot.slane %v983_v61, %v2217_v51  ;;  %v1020_v29 = vrot.slane %v986_v15, %v2220_v55 }
 0x6ea   :  { %v967_v54 = vpop.xlane.xlu0 %966  ;;  %v958_v56 = vpop.xlane.xlu1 %957 }
 0x6eb   :  { %v987_v62 = vmul.f32 %v1867_v58, %v967_v54  ;;  %v984_v5 = vmul.f32 %v1869_v59, %v958_v56  ;;  %v1006_v32 = vsel %vm538_vm3, %v1005_v17, %v1001_v28 }
 0x6ec   :  { %v1871_v60 = vpop.eup %1870 }
 0x6ed   :  { %v1873_v63 = vpop.eup %1872  ;;  %v1024_v18 = vrot.slane %v987_v62, %v2217_v51  ;;  %v1010_v20 = vrot.slane %v984_v5, %v2223_v7 }
 0x6ee   :  { %v970_v12 = vpop.xlane.xlu0 %969  ;;  %v961_v13 = vpop.xlane.xlu1 %960 }
 0x6ef   :  { %v988_v16 = vmul.f32 %v1871_v60, %v970_v12  ;;  %v985_v8 = vmul.f32 %v1873_v63, %v961_v13  ;;  %v1025_v34 = vsel %vm538_vm3, %v1024_v18, %v1020_v29  ;;  %v1011_v36 = vsel %vm545_vm4, %v1010_v20, %v1006_v32 }
 0x6f0   :  { %v1875_v19 = vpop.eup %1874 }
 0x6f1   :  { %v1029_v21 = vrot.slane %v988_v16, %v2223_v7  ;;  %v1015_v30 = vrot.slane %v985_v8, %v2226_v57 }
 0x6f2   :  { %v973_v22 = vpop.xlane.xlu0 %972 }
 0x6f3   :  { %v989_v31 = vmul.f32 %v1875_v19, %v973_v22  ;;  %v1030_v37 = vsel %vm545_vm4, %v1029_v21, %v1025_v34  ;;  %v1016_v6 = vsel %vm552_vm5, %v1015_v30, %v1011_v36 }
 0x6f5   :  { %v1034_v35 = vrot.slane %v989_v31, %v2226_v57 }
 0x6f7   :  { %v1035_v1 = vsel %vm552_vm5, %v1034_v35, %v1030_v37 }
 0x6f8   :  { %v1036_v38 = vsel %vm573_vm6, %v1035_v1, %v1016_v6 }
 0x6f9   :  { %1766 = vmatmul.mubr.msk.f32.vlgmr.msra.gmra.mxu0 %vm96_vm1, %v1036_v38 }
 0x6fa   :  { %1780 = vmatpush3.msra.mxu0 %v1908_v39  ;;  %1787 = vmatprep.mubr.msk.f32.mxu0 %vm2028_vm0, %v2027_v0 }
 0x6fb   :  { %1781 = vmatprep.subr.mxu0 %v2027_v0 }
 0x6fc   :  { %1782 = vmatpush3.msra.mxu0 %v1909_v2 }
 0x6fd   :  { %1783 = vmatprep.subr.mxu0 %v2027_v0 }
 0x6fe   :  { %1784 = vmatpush3.msra.mxu0 %v1910_v3 }
 0x6ff   :  { %1785 = vmatprep.subr.mxu0 %v2027_v0 }
 0x700   :  { %1786 = vmatpush3.msra.mxu0 %v1911_v4 }
 0x701   :  { %1788 = vmatmul.mubr.msk.f32.vlgmr.msra.gmra.mxu0 %vm96_vm1, %v1109_v40 }
 0x7b9   :  { %v1105_v9 = vpop.f32.mrf.mxu0 }
 0x7ba   :  { %v1106_v41 = vadd.f32 %v2257_v33, %v1105_v9 }
 0x7bb   :  { %v1767_v42 = vpop.f32.mrf.mxu0 }
 0x7bc   :  { %1777 = vmatmul.mubr.msk.f32.vlgmr.msra.gmra.mxu1 %vm96_vm1, %v1106_v41 }
 0x7bd   :  { %1791 = vmatpush3.msra.mxu1 %v2199_v24  ;;  %1798 = vmatprep.mubr.msk.f32.mxu1 %vm2028_vm0, %v2027_v0  ;;  %v1912_v24 = vld [vmem:[%s2434_s4] ss:$0 sm:$0xff]  ;;  %s2031_s4 = smov [#allocation10]  }
 0x7be   :  { %1792 = vmatprep.subr.mxu1 %v2027_v0  ;;  %s1652_s26 = sshll.u32 %s2031_s4, 4  ;;  %s1653_s26 = int_to_ptr.vmem [resolvable:$true] %s1652_s26 }
 0x7bf   :  { %1793 = vmatpush3.msra.mxu1 %v2203_v25  ;;  %s1993_s27 = scalar_lea.vmem %s1653_s26, 32  ;;  %p1998_p7 = scmp.lt.s32.totalorder %s1653_s26, %s1653_s26 }
 0x7c0   :  { %1794 = vmatprep.subr.mxu1 %v2027_v0  ;;  %p1994_p6 = scmp.ne.s32.totalorder %s1653_s26, %s1993_s27  ;;  %p1999_p8 = scmp.lt.s32.totalorder %s1993_s27, %s1993_s27 }
 0x7c1   :  { %1795 = vmatpush3.msra.mxu1 %v2206_v26  ;;  %v1252_v43 = vpop.f32.mrf.mxu0 }
 0x7c2   :  { %1796 = vmatprep.subr.mxu1 %v2027_v0  ;;  %v1253_v0 = vadd.f32 %v1912_v24, %v1252_v43  ;;  %p2000_p9 = por %p1999_p8, %p1998_p7 }
 0x7c3   :  { %1797 = vmatpush3.msra.mxu1 %v2209_v27  ;;  %v1789_v44 = vpop.f32.mrf.mxu0 }
 0x7c4   :  { %v1301_v26 = vrot.slane %v1253_v0, %v2150_v23  ;;  %p2001_p10 = pnand %p2000_p9, %p1994_p6 }
 0x7c6   :  { %v1309_v27 = vrot.slane %v1301_v26, %v2150_v23  ;;  %v1302_v49 = vcombine.high %v1301_v26, %v1301_v26 }
 0x7c8   :  { %v1320_v50 = vrot.slane %v1309_v27, %v2140_v10  ;;  %v1316_v52 = vrot.slane %v1302_v49, %v2150_v23 }
 0x7ca   :  { %v1324_v58 = vrot.slane %v1316_v52, %v2140_v10 }
 0x87c   :  { %v1179_v45 = vpop.f32.mrf.mxu1 }
 0x87d   :  { %v1180_v46 = vadd.f32 %v1912_v24, %v1179_v45 }
 0x87e   :  { %v1778_v47 = vpop.f32.mrf.mxu1 }
 0x87f   :  { %v1259_v48 = vrot.slane %v1180_v46, %v2140_v10  ;;  %v1278_v25 = vrot.slane %v1180_v46, %v2143_v11 }
 0x881   :  { %1265 = vbcast.lane.b32.xlu0 %v1259_v48, 264  ;;  %1261 = vbcast.lane.b32.xlu1 %v1259_v48, 256 }
 0x885   :  { %1269 = vbcast.lane.b32.xlu0 %v1259_v48, 272  ;;  %1280 = vbcast.lane.b32.xlu1 %v1278_v25, 256 }
 0x889   :  { %1273 = vbcast.lane.b32.xlu0 %v1259_v48, 280  ;;  %1284 = vbcast.lane.b32.xlu1 %v1278_v25, 264 }
 0x88d   :  { %1288 = vbcast.lane.b32.xlu1 %v1278_v25, 272 }
 0x891   :  { %1292 = vbcast.lane.b32.xlu1 %v1278_v25, 280 }
 0x8f3   :  { %v1266_v53 = vpop.permute.xlu0 %1265  ;;  %v1262_v54 = vpop.permute.xlu1 %1261 }
 0x8f4   :  { %v1328_v56 = vmul.f32 %v1320_v50, %v1266_v53  ;;  %v1327_v11 = vmul.f32 %v1320_v50, %v1262_v54 }
 0x8f6   :  { %v1338_v59 = vsel %vm322_vm2, %v1328_v56, -inf  ;;  %v1335_v60 = vsel %vm322_vm2, %v1327_v11, -inf }
 0x8f7   :  { %v1270_v61 = vpop.permute.xlu0 %1269  ;;  %v1281_v62 = vpop.permute.xlu1 %1280  ;;  %1339 = vmax.xlane.f32.xlu1 %v1338_v59  ;;  %1336 = vmax.xlane.f32.xlu0 %v1335_v60 }
 0x8f8   :  { %v1329_v63 = vmul.f32 %v1320_v50, %v1270_v61  ;;  %v1331_v5 = vmul.f32 %v1324_v58, %v1281_v62 }
 0x8fa   :  { %v1341_v12 = vsel %vm322_vm2, %v1329_v63, -inf  ;;  %v1347_v23 = vsel %vm322_vm2, %v1331_v5, -inf }
 0x8fb   :  { %v1274_v13 = vpop.permute.xlu0 %1273  ;;  %v1285_v14 = vpop.permute.xlu1 %1284  ;;  %1342 = vmax.xlane.f32.xlu1 %v1341_v12  ;;  %1348 = vmax.xlane.f32.xlu0 %v1347_v23 }
 0x8fc   :  { %v1330_v15 = vmul.f32 %v1320_v50, %v1274_v13  ;;  %v1332_v10 = vmul.f32 %v1324_v58, %v1285_v14 }
 0x8fe   :  { %v1344_v16 = vsel %vm322_vm2, %v1330_v15, -inf  ;;  %v1350_v8 = vsel %vm322_vm2, %v1332_v10, -inf }
 0x8ff   :  { %v1289_v17 = vpop.permute.xlu1 %1288  ;;  %1345 = vmax.xlane.f32.xlu1 %v1344_v16  ;;  %1351 = vmax.xlane.f32.xlu0 %v1350_v8 }
 0x900   :  { %v1333_v18 = vmul.f32 %v1324_v58, %v1289_v17 }
 0x902   :  { %v1353_v19 = vsel %vm322_vm2, %v1333_v18, -inf }
 0x903   :  { %v1293_v20 = vpop.permute.xlu1 %1292  ;;  %1354 = vmax.xlane.f32.xlu0 %v1353_v19 }
 0x904   :  { %v1334_v21 = vmul.f32 %v1324_v58, %v1293_v20 }
 0x906   :  { %v1356_v22 = vsel %vm322_vm2, %v1334_v21, -inf }
 0x907   :  { %1357 = vmax.xlane.f32.xlu0 %v1356_v22 }
 0x910   :  { %1439 = vrot.lane.b32.xlu1 %v1320_v50, %s2030_s21 }
 0x91d   :  { %1441 = vrot.lane.b32.xlu0 %v1324_v58, %s2030_s21 }
 0x980   :  { %v1340_v28 = vpop.xlane.xlu1 %1339  ;;  %v1337_v29 = vpop.xlane.xlu0 %1336 }
 0x981   :  { %v1360_v30 = vsub.f32 %v1328_v56, %v1340_v28  ;;  %v1359_v31 = vsub.f32 %v1327_v11, %v1337_v29 }
 0x983   :  { %v1367_v32 = vmul.f32 1.442695, %v1359_v31  ;;  %v1369_v36 = vmul.f32 1.442695, %v1360_v30 }
 0x984   :  { %v1343_v34 = vpop.xlane.xlu1 %1342  ;;  %v1349_v35 = vpop.xlane.xlu0 %1348 }
 0x985   :  { %v1361_v37 = vsub.f32 %v1329_v63, %v1343_v34  ;;  %v1363_v6 = vsub.f32 %v1331_v5, %v1349_v35  ;;  %1876 = vpow2.f32 %v1367_v32 }
 0x986   :  { %1878 = vpow2.f32 %v1369_v36 }
 0x987   :  { %v1375_v1 = vmul.f32 1.442695, %v1363_v6  ;;  %v1371_v2 = vmul.f32 1.442695, %v1361_v37 }
 0x988   :  { %v1346_v38 = vpop.xlane.xlu1 %1345  ;;  %v1352_v39 = vpop.xlane.xlu0 %1351 }
 0x989   :  { %v1364_v3 = vsub.f32 %v1332_v10, %v1352_v39  ;;  %1880 = vpow2.f32 %v1375_v1  ;;  %v1362_v4 = vsub.f32 %v1330_v15, %v1346_v38 }
 0x98a   :  { %1882 = vpow2.f32 %v1371_v2 }
 0x98b   :  { %v1377_v40 = vmul.f32 1.442695, %v1364_v3  ;;  %v1373_v42 = vmul.f32 1.442695, %v1362_v4 }
 0x98c   :  { %v1355_v9 = vpop.xlane.xlu0 %1354  ;;  %v1440_v49 = vpop.permute.xlu1 %1439 }
 0x98d   :  { %v1365_v41 = vsub.f32 %v1333_v18, %v1355_v9  ;;  %1884 = vpow2.f32 %v1377_v40 }
 0x98f   :  { %v1379_v43 = vmul.f32 1.442695, %v1365_v41 }
 0x990   :  { %v1358_v44 = vpop.xlane.xlu0 %1357 }
 0x991   :  { %1886 = vpow2.f32 %v1379_v43  ;;  %v1366_v45 = vsub.f32 %v1334_v21, %v1358_v44 }
 0x992   :  { %1888 = vpow2.f32 %v1373_v42  ;;  %v1877_v24 = vpop.eup %1876 }
 0x993   :  { %v1381_v46 = vmul.f32 1.442695, %v1366_v45  ;;  %1391 = vrot.lane.b32.xlu1 %v1877_v24, %s2030_s21  ;;  %v1879_v47 = vpop.eup %1878  ;;  %v1445_v52 = vmul.f32 %v1877_v24, %v1440_v49 }
 0x994   :  { %v1442_v53 = vpop.permute.xlu0 %1441  ;;  %v1446_v54 = vmul.f32 %v1879_v47, %v1440_v49 }
 0x995   :  { %1890 = vpow2.f32 %v1381_v46 }
 0x996   :  { %v1881_v48 = vpop.eup %1880 }
 0x997   :  { %1393 = vrot.lane.b32.xlu1 %v1879_v47, %s2030_s21  ;;  %1399 = vrot.lane.b32.xlu0 %v1881_v48, %s2030_s21  ;;  %v1883_v25 = vpop.eup %1882  ;;  %v1449_v56 = vmul.f32 %v1881_v48, %v1442_v53 }
 0x998   :  { %v1447_v11 = vmul.f32 %v1883_v25, %v1440_v49 }
 0x99a   :  { %v1885_v0 = vpop.eup %1884 }
 0x99b   :  { %1395 = vrot.lane.b32.xlu0 %v1883_v25, %s2030_s21  ;;  %1401 = vrot.lane.b32.xlu1 %v1885_v0, %s2030_s21  ;;  %v1450_v58 = vmul.f32 %v1885_v0, %v1442_v53 }
 0x99e   :  { %v1887_v26 = vpop.eup %1886 }
 0x99f   :  { %v1889_v27 = vpop.eup %1888  ;;  %1403 = vrot.lane.b32.xlu1 %v1887_v26, %s2030_s21  ;;  %v1451_v60 = vmul.f32 %v1887_v26, %v1442_v53 }
 0x9a0   :  { %1397 = vrot.lane.b32.xlu0 %v1889_v27, %s2030_s21  ;;  %v1448_v59 = vmul.f32 %v1889_v27, %v1440_v49 }
 0x9a2   :  { %v1891_v50 = vpop.eup %1890 }
 0x9a3   :  { %1405 = vrot.lane.b32.xlu1 %v1891_v50, %s2030_s21  ;;  %v1452_v61 = vmul.f32 %v1891_v50, %v1442_v53 }
 0x9a4   :  { %1461 = vrot.lane.b32.xlu0 %v1445_v52, %s2030_s21 }
 0x9a7   :  { %1463 = vrot.lane.b32.xlu1 %v1446_v54, %s2030_s21 }
 0x9a8   :  { %1469 = vrot.lane.b32.xlu0 %v1449_v56, %s2030_s21 }
 0x9ab   :  { %1471 = vrot.lane.b32.xlu1 %v1450_v58, %s2030_s21 }
 0x9ac   :  { %1465 = vrot.lane.b32.xlu0 %v1447_v11, %s2030_s21 }
 0x9af   :  { %1473 = vrot.lane.b32.xlu1 %v1451_v60, %s2030_s21 }
 0x9b0   :  { %1467 = vrot.lane.b32.xlu0 %v1448_v59, %s2030_s21 }
 0x9b3   :  { %1475 = vrot.lane.b32.xlu1 %v1452_v61, %s2030_s21 }
 0xa05   :  { %v1392_v62 = vpop.permute.xlu1 %1391 }
 0xa06   :  { %v1415_v63 = vsel %vm96_vm1, %v1392_v62, 0.0 }
 0xa07   :  { %1416 = vadd.xlane.f32.xlu0 %v1415_v63 }
 0xa09   :  { %v1394_v5 = vpop.permute.xlu1 %1393  ;;  %v1400_v12 = vpop.permute.xlu0 %1399 }
 0xa0a   :  { %v1418_v23 = vsel %vm96_vm1, %v1394_v5, 0.0  ;;  %v1427_v13 = vsel %vm96_vm1, %v1400_v12, 0.0 }
 0xa0b   :  { %1419 = vadd.xlane.f32.xlu1 %v1418_v23  ;;  %1428 = vadd.xlane.f32.xlu0 %v1427_v13 }
 0xa0d   :  { %v1402_v14 = vpop.permute.xlu1 %1401  ;;  %v1396_v15 = vpop.permute.xlu0 %1395 }
 0xa0e   :  { %v1430_v10 = vsel %vm96_vm1, %v1402_v14, 0.0  ;;  %v1421_v16 = vsel %vm96_vm1, %v1396_v15, 0.0 }
 0xa0f   :  { %1431 = vadd.xlane.f32.xlu0 %v1430_v10  ;;  %1422 = vadd.xlane.f32.xlu1 %v1421_v16 }
 0xa11   :  { %v1404_v8 = vpop.permute.xlu1 %1403 }
 0xa12   :  { %v1398_v17 = vpop.permute.xlu0 %1397  ;;  %v1433_v18 = vsel %vm96_vm1, %v1404_v8, 0.0 }
 0xa13   :  { %v1424_v19 = vsel %vm96_vm1, %v1398_v17, 0.0  ;;  %1434 = vadd.xlane.f32.xlu0 %v1433_v18 }
 0xa14   :  { %1425 = vadd.xlane.f32.xlu1 %v1424_v19 }
 0xa15   :  { %v1406_v20 = vpop.permute.xlu1 %1405 }
 0xa16   :  { %v1462_v21 = vpop.permute.xlu0 %1461  ;;  %v1436_v22 = vsel %vm96_vm1, %v1406_v20, 0.0 }
 0xa17   :  { %v1485_v28 = vsel %vm96_vm1, %v1462_v21, 0.0  ;;  %1437 = vadd.xlane.f32.xlu0 %v1436_v22 }
 0xa18   :  { %1486 = vadd.xlane.f32.xlu1 %v1485_v28 }
 0xa19   :  { %v1464_v29 = vpop.permute.xlu1 %1463 }
 0xa1a   :  { %v1470_v30 = vpop.permute.xlu0 %1469  ;;  %v1488_v31 = vsel %vm96_vm1, %v1464_v29, 0.0 }
 0xa1b   :  { %v1497_v32 = vsel %vm96_vm1, %v1470_v30, 0.0  ;;  %1489 = vadd.xlane.f32.xlu0 %v1488_v31 }
 0xa1c   :  { %1498 = vadd.xlane.f32.xlu1 %v1497_v32 }
 0xa1d   :  { %v1472_v34 = vpop.permute.xlu1 %1471 }
 0xa1e   :  { %v1466_v35 = vpop.permute.xlu0 %1465  ;;  %v1500_v36 = vsel %vm96_vm1, %v1472_v34, 0.0 }
 0xa1f   :  { %v1491_v37 = vsel %vm96_vm1, %v1466_v35, 0.0  ;;  %1501 = vadd.xlane.f32.xlu0 %v1500_v36 }
 0xa20   :  { %1492 = vadd.xlane.f32.xlu1 %v1491_v37 }
 0xa21   :  { %v1474_v6 = vpop.permute.xlu1 %1473 }
 0xa22   :  { %v1468_v1 = vpop.permute.xlu0 %1467  ;;  %v1503_v38 = vsel %vm96_vm1, %v1474_v6, 0.0 }
 0xa23   :  { %v1494_v39 = vsel %vm96_vm1, %v1468_v1, 0.0  ;;  %1504 = vadd.xlane.f32.xlu0 %v1503_v38 }
 0xa24   :  { %1495 = vadd.xlane.f32.xlu1 %v1494_v39 }
 0xa25   :  { %v1476_v2 = vpop.permute.xlu1 %1475 }
 0xa26   :  { %v1506_v3 = vsel %vm96_vm1, %v1476_v2, 0.0 }
 0xa27   :  { %1507 = vadd.xlane.f32.xlu0 %v1506_v3 }
 0xa90   :  { %v1417_v4 = vpop.xlane.xlu0 %1416 }
 0xa91   :  { %1892 = vrcp.f32 %v1417_v4 }
 0xa94   :  { %v1420_v40 = vpop.xlane.xlu1 %1419  ;;  %v1429_v9 = vpop.xlane.xlu0 %1428 }
 0xa95   :  { %1894 = vrcp.f32 %v1420_v40 }
 0xa96   :  { %1896 = vrcp.f32 %v1429_v9 }
 0xa98   :  { %v1423_v41 = vpop.xlane.xlu1 %1422  ;;  %v1432_v42 = vpop.xlane.xlu0 %1431 }
 0xa99   :  { %1898 = vrcp.f32 %v1423_v41 }
 0xa9a   :  { %1900 = vrcp.f32 %v1432_v42 }
 0xa9c   :  { %v1435_v44 = vpop.xlane.xlu0 %1434 }
 0xa9d   :  { %v1426_v43 = vpop.xlane.xlu1 %1425 }
 0xa9e   :  { %1902 = vrcp.f32 %v1426_v43  ;;  %v1893_v48 = vpop.eup %1892 }
 0xa9f   :  { %1904 = vrcp.f32 %v1435_v44 }
 0xaa0   :  { %v1438_v24 = vpop.xlane.xlu0 %1437 }
 0xaa1   :  { %v1487_v45 = vpop.xlane.xlu1 %1486  ;;  %1906 = vrcp.f32 %v1438_v24 }
 0xaa2   :  { %v1895_v25 = vpop.eup %1894  ;;  %v1517_v60 = vmul.f32 %v1893_v48, %v1487_v45 }
 0xaa3   :  { %v1897_v0 = vpop.eup %1896 }
 0xaa4   :  { %v1490_v47 = vpop.xlane.xlu0 %1489  ;;  %v1536_v10 = vrot.slane %v1517_v60, %v2220_v55 }
 0xaa5   :  { %v1499_v46 = vpop.xlane.xlu1 %1498  ;;  %v1518_v53 = vmul.f32 %v1895_v25, %v1490_v47 }
 0xaa6   :  { %v1899_v49 = vpop.eup %1898  ;;  %v1521_v61 = vmul.f32 %v1897_v0, %v1499_v46 }
 0xaa7   :  { %v1901_v50 = vpop.eup %1900  ;;  %v1540_v5 = vrot.slane %v1518_v53, %v2217_v51 }
 0xaa8   :  { %v1502_v27 = vpop.xlane.xlu0 %1501  ;;  %v1555_v16 = vrot.slane %v1521_v61, %v2220_v55 }
 0xaa9   :  { %v1493_v26 = vpop.xlane.xlu1 %1492  ;;  %v1522_v54 = vmul.f32 %v1901_v50, %v1502_v27  ;;  %v1541_v18 = vsel %vm538_vm3, %v1540_v5, %v1536_v10 }
 0xaaa   :  { %v1519_v11 = vmul.f32 %v1899_v49, %v1493_v26 }
 0xaab   :  { %v1903_v52 = vpop.eup %1902  ;;  %v1559_v12 = vrot.slane %v1522_v54, %v2217_v51 }
 0xaac   :  { %v1905_v56 = vpop.eup %1904  ;;  %v1505_v59 = vpop.xlane.xlu0 %1504  ;;  %v1545_v13 = vrot.slane %v1519_v11, %v2223_v7 }
 0xaad   :  { %v1496_v58 = vpop.xlane.xlu1 %1495  ;;  %v1523_v63 = vmul.f32 %v1905_v56, %v1505_v59  ;;  %v1560_v19 = vsel %vm538_vm3, %v1559_v12, %v1555_v16 }
 0xaae   :  { %v1520_v62 = vmul.f32 %v1903_v52, %v1496_v58  ;;  %v1907_v23 = vpop.eup %1906  ;;  %v1546_v51 = vsel %vm545_vm4, %v1545_v13, %v1541_v18 }
 0xaaf   :  { %v1564_v14 = vrot.slane %v1523_v63, %v2223_v7 }
 0xab0   :  { %v1508_v15 = vpop.xlane.xlu0 %1507  ;;  %v1550_v8 = vrot.slane %v1520_v62, %v2226_v57 }
 0xab1   :  { %v1524_v17 = vmul.f32 %v1907_v23, %v1508_v15  ;;  %v1565_v21 = vsel %vm545_vm4, %v1564_v14, %v1560_v19 }
 0xab2   :  { %v1551_v7 = vsel %vm552_vm5, %v1550_v8, %v1546_v51 }
 0xab3   :  { %v1569_v20 = vrot.slane %v1524_v17, %v2226_v57 }
 0xab5   :  { %v1570_v22 = vsel %vm552_vm5, %v1569_v20, %v1565_v21 }
 0xab6   :  { %v1571_v28 = vsel %vm573_vm6, %v1570_v22, %v1551_v7 }
 0xab7   :  { %1799 = vmatmul.mubr.msk.f32.vlgmr.msra.gmra.mxu1 %vm96_vm1, %v1571_v28 }
 0xb77   :  { %v1640_v55 = vpop.f32.mrf.mxu1 }
 0xb78   :  { %v1641_v29 = vadd.f32 %v2257_v33, %v1640_v55 }
 0xb79   :  { %v1800_v57 = vpop.f32.mrf.mxu1 }
 0xb7a   :  { %1645 = vst.msk [vmem:[#allocation10] sm:$0x3] %vm1644_vm7, %v1641_v29 }
 0xb7b   :  { %2004 = shalt.err (!%p2001_p10)
}
 0xb7c   :  { %1655 = dma.vmem_to_hbm [thread:$0]  %s1653_s26, 32, %s2437_s7, [#allocation4]  }
 0xb7d   :  { %2019 = dma.done.wait [#allocation4], 32  }
 0xb7e   :  { %2020 = vsyncadd [#allocation4], 4294967264 }
 0xb7f   :  { %1659 = vsyncpa [#allocation3], 1 }
 0xb80   :  { %1660 = vsyncpa [#allocation6], 1 }
 0xb81   :  { %1661 = vsyncpa [#allocation9], 1 }
 0xb82   :  { %1662 = vsyncpa [#allocation4], 1 }

</bundles_post_ra>
